<compile_context>
chip_gen: v7x
topology: tpu7x:2x2x1
jax: 0.10.0
libtpu: 0.0.40
codegen_flags: <defaults>
</compile_context>

<pallas_src>
import math

import jax
import jax.numpy as jnp
from jax import lax
from jax.experimental import pallas as pl
from jax.experimental.pallas import tpu as pltpu

# ---------------- model dims (small, consistent with the module) ----------------
S = 8          # sequence length
B = 2          # batch
D = 32         # d_model
H = 4          # nhead
HD = D // H    # head dim
FF = 64        # dim_feedforward
N_LAYERS = 2   # number of cloned encoder layers
EPS = 1e-5     # nn.LayerNorm default eps
N = S * B      # rows of the fused activation slab (seq-major: row = s*B + b)

# packed weight-slab column offsets: [wq*scale | wk | wv | wo | w1 | w2^T]
_WQK0, _WQK1 = 0, 2 * D              # fused q|k projection            (64 cols)
_WV0, _WV1 = 2 * D, 3 * D            # v projection                    (32 cols)
_WO0, _WO1 = 3 * D, 4 * D            # attention output projection     (32 cols)
_W10, _W11 = 4 * D, 4 * D + FF       # linear1                         (64 cols)
_W20, _W21 = 4 * D + FF, 4 * D + 2 * FF   # linear2, transposed        (64 cols)
W_COLS = _W21                        # 256 = exactly 2 vregs wide

# packed vector-bundle row indices (each row is 2*D = 64 lanes wide)
_R_BQK, _R_B1, _R_BV, _R_BO, _R_B2, _R_G1, _R_BE1, _R_G2, _R_BE2 = range(9)
V_ROWS = 16


def _layer_norm(x, gamma, beta):
    mu = jnp.mean(x, axis=-1, keepdims=True)
    var = jnp.mean((x - mu) ** 2, axis=-1, keepdims=True)
    return (x - mu) * lax.rsqrt(var + EPS) * gamma + beta


# ---------------- fused Pallas kernel: full encoder stack -------------------------
def _make_kernel(apply_final_norm: bool):
    def _forward(x_ref, pos_ref, w_ref, vd_ref, fgb_ref, out_ref):
        x = x_ref[...]            # (N, D) seq-major activation slab, resident all layers
        p = pos_ref[...]          # (N, D)

        # Block-diagonal "same batch" additive bias, built once (hoisted out of the loop).
        ri = lax.broadcasted_iota(jnp.int32, (N, N), 0)
        ci = lax.broadcasted_iota(jnp.int32, (N, N), 1)
        bias = jnp.where((ri % B) == (ci % B), 0.0, -1e9).astype(jnp.float32)
        bias = bias[None, :, :]                                        # (1, N, N)

        for l in range(N_LAYERS):                  # static unroll over cloned layers
            w = w_ref[l]                           # (D, 256) packed weight slab
            vd = vd_ref[l]                         # (16, 2D) packed vector bundle
            wqk = w[:, _WQK0:_WQK1]                # (D, 2D), wq pre-scaled by 1/sqrt(HD)
            wv = w[:, _WV0:_WV1]
            wo = w[:, _WO0:_WO1]
            w1 = w[:, _W10:_W11]
            w2t = w[:, _W20:_W21]                  # (D, FF) == linear2.weight-layout (w2^T)

            bqk = vd[_R_BQK:_R_BQK + 1]            # (1, 2D), bq pre-scaled
            b1 = vd[_R_B1:_R_B1 + 1]               # (1, FF)
            bv = vd[_R_BV:_R_BV + 1, :D]
            bo = vd[_R_BO:_R_BO + 1, :D]
            b2 = vd[_R_B2:_R_B2 + 1, :D]
            g1 = vd[_R_G1:_R_G1 + 1, :D]
            be1 = vd[_R_BE1:_R_BE1 + 1, :D]
            g2 = vd[_R_G2:_R_G2 + 1, :D]
            be2 = vd[_R_BE2:_R_BE2 + 1, :D]

            # --- multi-head self attention: q = k = x + pos, v = x ------------------
            qk = jnp.dot(x + p, wqk, preferred_element_type=jnp.float32) + bqk   # (N, 2D)
            v = jnp.dot(x, wv, preferred_element_type=jnp.float32) + bv          # (N, D)

            # Heads batched along the leading einsum-batch axis (one softmax chain/layer).
            qh = jnp.stack([qk[:, h * HD:(h + 1) * HD] for h in range(H)], axis=0)
            kh = jnp.stack([qk[:, D + h * HD:D + (h + 1) * HD] for h in range(H)], axis=0)
            vh = jnp.stack([v[:, h * HD:(h + 1) * HD] for h in range(H)], axis=0)  # (H,N,HD)

            s = jnp.einsum('hqd,hkd->hqk', qh, kh,
                           preferred_element_type=jnp.float32) + bias             # (H, N, N)
            s = s - jnp.max(s, axis=-1, keepdims=True)
            e = jnp.exp(s)
            probs = e * pl.reciprocal(jnp.sum(e, axis=-1, keepdims=True), approx=True)
            ctx = jnp.einsum('hqk,hkd->hqd', probs, vh,
                             preferred_element_type=jnp.float32)                  # (H, N, HD)
            ctx2 = jnp.concatenate([ctx[h] for h in range(H)], axis=-1)            # (N, D)
            attn = jnp.dot(ctx2, wo, preferred_element_type=jnp.float32) + bo

            # --- residual + norm1 ----------------------------------------------------
            x1 = _layer_norm(x + attn, g1, be1)

            # --- feed forward: linear1 -> relu -> linear2 (w2 stored transposed) -----
            hdn = jnp.maximum(jnp.dot(x1, w1, preferred_element_type=jnp.float32) + b1, 0.0)
            ff = lax.dot_general(hdn, w2t, (((1,), (1,)), ((), ())),
                                 preferred_element_type=jnp.float32) + b2

            # --- residual + norm2 ----------------------------------------------------
            x = _layer_norm(x1 + ff, g2, be2)

        if apply_final_norm:                        # stack-level self.norm
            fgb = fgb_ref[...]
            x = _layer_norm(x, fgb[0:1], fgb[1:2])

        out_ref[...] = x

    if apply_final_norm:
        def kernel(x_ref, pos_ref, w_ref, vd_ref, fgb_ref, out_ref):
            _forward(x_ref, pos_ref, w_ref, vd_ref, fgb_ref, out_ref)
    else:
        def kernel(x_ref, pos_ref, w_ref, vd_ref, out_ref):
            _forward(x_ref, pos_ref, w_ref, vd_ref, None, out_ref)
    return kernel


# ---------------- wrapper ----------------------------------------------------------
def transformer_encoder(src_sbd, pos_sbd, packed, final_gb=None):
    """Forward of the stacked TransformerEncoderLayer. src/pos: (S, B, D) seq-first."""
    x = src_sbd.reshape(N, D)       # free leading-dim merge, no transpose
    pos = pos_sbd.reshape(N, D)
    apply_final = final_gb is not None

    vmem = pl.BlockSpec(memory_space=pltpu.MemorySpace.VMEM)
    inputs = [x, pos, packed["w"], packed["vd"]]
    if apply_final:
        inputs.append(final_gb)

    out2d = pl.pallas_call(
        _make_kernel(apply_final),
        out_shape=jax.ShapeDtypeStruct((N, D), jnp.float32),
        in_specs=[vmem] * len(inputs),
        out_specs=vmem,
        # no grid: single invocation, all operands live whole-array in VMEM (~80 KiB)
    )(*inputs)
    return out2d.reshape(S, B, D)   # back to (S, B, D), no transpose


# ---------------- parameters: natural per-layer params + host-side packing ---------
def init_layer_params(key):
    s = 0.02
    layers = []
    for lk in jax.random.split(key, N_LAYERS):
        ks = jax.random.split(lk, 8)
        layers.append(dict(
            wq=jax.random.normal(ks[0], (D, D), jnp.float32) * s,
            wk=jax.random.normal(ks[1], (D, D), jnp.float32) * s,
            wv=jax.random.normal(ks[2], (D, D), jnp.float32) * s,
            wo=jax.random.normal(ks[3], (D, D), jnp.float32) * s,
            bo=jax.random.normal(ks[4], (1, D), jnp.float32) * s,
            w1=jax.random.normal(ks[5], (D, FF), jnp.float32) * s,
            b1=jax.random.normal(ks[6], (1, FF), jnp.float32) * s,
            w2=jax.random.normal(ks[7], (FF, D), jnp.float32) * s,
            bq=jnp.zeros((1, D), jnp.float32), bk=jnp.zeros((1, D), jnp.float32),
            bv=jnp.zeros((1, D), jnp.float32), b2=jnp.zeros((1, D), jnp.float32),
            g1=jnp.ones((1, D), jnp.float32), be1=jnp.zeros((1, D), jnp.float32),
            g2=jnp.ones((1, D), jnp.float32), be2=jnp.zeros((1, D), jnp.float32),
        ))
    return layers


def pack_params(layers):
    """Pack per-layer params into 2 stacked slabs (2 DMAs). Scale folded into wq/bq."""
    scale = 1.0 / math.sqrt(HD)
    w_l, vd_l = [], []
    for lp in layers:
        w = jnp.concatenate([lp["wq"] * scale, lp["wk"], lp["wv"], lp["wo"],
                             lp["w1"], lp["w2"].T], axis=1)                 # (D, 256)
        assert w.shape == (D, W_COLS)
        pad = jnp.zeros((1, D), jnp.float32)
        rows = [jnp.concatenate([lp["bq"] * scale, lp["bk"]], axis=1),      # bqk (1, 2D)
                lp["b1"]]                                                   # (1, FF)
        for name in ("bv", "bo", "b2", "g1", "be1", "g2", "be2"):
            rows.append(jnp.concatenate([lp[name], pad], axis=1))
        rows.append(jnp.zeros((V_ROWS - len(rows), 2 * D), jnp.float32))
        vd_l.append(jnp.concatenate(rows, axis=0))                          # (16, 2D)
        w_l.append(w)
    return {"w": jnp.stack(w_l, 0), "vd": jnp.stack(vd_l, 0)}


# ---------------- pure-JAX reference (natural params, PyTorch semantics) ------------
def reference_forward(src_sbd, pos_sbd, layers, final_gb):
    x = jnp.transpose(src_sbd, (1, 0, 2))   # (B, S, D)
    p = jnp.transpose(pos_sbd, (1, 0, 2))
    scale = 1.0 / math.sqrt(HD)
    for lp in layers:
        q = ((x + p) @ lp["wq"] + lp["bq"]) * scale
        k = (x + p) @ lp["wk"] + lp["bk"]
        v = x @ lp["wv"] + lp["bv"]
        qh = q.reshape(B, S, H, HD)
        kh = k.reshape(B, S, H, HD)
        vh = v.reshape(B, S, H, HD)
        sc = jnp.einsum('bqhd,bkhd->bhqk', qh, kh)
        probs = jax.nn.softmax(sc, axis=-1)
        ctx = jnp.einsum('bhqk,bkhd->bqhd', probs, vh).reshape(B, S, D)
        attn = ctx @ lp["wo"] + lp["bo"]
        x1 = _layer_norm(x + attn, lp["g1"], lp["be1"])
        ff = jnp.maximum(x1 @ lp["w1"] + lp["b1"], 0.0) @ lp["w2"] + lp["b2"]
        x = _layer_norm(x1 + ff, lp["g2"], lp["be2"])
    if final_gb is not None:
        x = _layer_norm(x, final_gb[0:1], final_gb[1:2])
    return jnp.transpose(x, (1, 0, 2))


if __name__ == "__main__":
    key = jax.random.PRNGKey(0)
    k_src, k_pos, k_par = jax.random.split(key, 3)

    src = jax.random.normal(k_src, (S, B, D), jnp.float32)   # (S, B, D), seq-first
    pos = jax.random.normal(k_pos, (S, B, D), jnp.float32)

    layers = init_layer_params(k_par)
    final_gb = jnp.concatenate([jnp.ones((1, D), jnp.float32),
                                jnp.zeros((1, D), jnp.float32)], axis=0)  # self.norm
    packed = pack_params(layers)

    out = transformer_encoder(src, pos, packed, final_gb)
    jax.block_until_ready(out)
    assert out.shape == (S, B, D) and out.dtype == jnp.float32

    ref = reference_forward(src, pos, layers, final_gb)
    err = float(jnp.max(jnp.abs(out - ref)))
    assert err < 5e-3, f"max abs err {err}"

    print("KERNEL_OK")
</pallas_src>

<mosaic_0001>
module attributes {stable_mosaic.version = 11 : i64} {
  func.func @kernel(%arg0: memref<16x32xf32, #tpu.memory_space<vmem>>, %arg1: memref<16x32xf32, #tpu.memory_space<vmem>>, %arg2: memref<2x32x256xf32, #tpu.memory_space<vmem>>, %arg3: memref<2x16x64xf32, #tpu.memory_space<vmem>>, %arg4: memref<2x32xf32, #tpu.memory_space<vmem>>, %arg5: memref<16x32xf32, #tpu.memory_space<vmem>>) attributes {dimension_semantics = [], scalar_prefetch = 0 : i64, scratch_operands = 0 : i64, tpu.core_type = #tpu.core_type<tc>} {
    %c0 = arith.constant 0 : index
    %c0_0 = arith.constant 0 : index
    %0 = vector.load %arg0[%c0, %c0_0] : memref<16x32xf32, #tpu.memory_space<vmem>>, vector<16x32xf32>
    %c0_1 = arith.constant 0 : index
    %c0_2 = arith.constant 0 : index
    %1 = vector.load %arg1[%c0_1, %c0_2] : memref<16x32xf32, #tpu.memory_space<vmem>>, vector<16x32xf32>
    %2 = tpu.iota {dimensions = array<i32: 0>} : vector<16x16xi32>
    %3 = tpu.iota {dimensions = array<i32: 1>} : vector<16x16xi32>
    %c2_i32 = arith.constant 2 : i32
    %c0_i32 = arith.constant 0 : i32
    %4 = arith.cmpi eq, %c2_i32, %c0_i32 : i32
    %c1_i32 = arith.constant 1 : i32
    %5 = arith.select %4, %c1_i32, %c2_i32 : i32
    %6 = vector.broadcast %5 : i32 to vector<16x16xi32>
    %7 = arith.remsi %2, %6 : vector<16x16xi32>
    %c0_i32_3 = arith.constant 0 : i32
    %8 = vector.broadcast %c0_i32_3 : i32 to vector<16x16xi32>
    %9 = arith.cmpi ne, %7, %8 : vector<16x16xi32>
    %c0_i32_4 = arith.constant 0 : i32
    %10 = vector.broadcast %c0_i32_4 : i32 to vector<16x16xi32>
    %11 = arith.cmpi slt, %7, %10 : vector<16x16xi32>
    %c0_i32_5 = arith.constant 0 : i32
    %12 = arith.cmpi slt, %5, %c0_i32_5 : i32
    %13 = vector.broadcast %12 : i1 to vector<16x16xi1>
    %14 = vector.broadcast %13 : vector<16x16xi1> to vector<16x16xi1>
    %15 = arith.xori %11, %14 : vector<16x16xi1>
    %16 = arith.andi %15, %9 : vector<16x16xi1>
    %17 = vector.broadcast %5 : i32 to vector<16x16xi32>
    %18 = arith.addi %7, %17 : vector<16x16xi32>
    %19 = arith.select %16, %18, %7 : vector<16x16xi1>, vector<16x16xi32>
    %c2_i32_6 = arith.constant 2 : i32
    %c0_i32_7 = arith.constant 0 : i32
    %20 = arith.cmpi eq, %c2_i32_6, %c0_i32_7 : i32
    %c1_i32_8 = arith.constant 1 : i32
    %21 = arith.select %20, %c1_i32_8, %c2_i32_6 : i32
    %22 = vector.broadcast %21 : i32 to vector<16x16xi32>
    %23 = arith.remsi %3, %22 : vector<16x16xi32>
    %c0_i32_9 = arith.constant 0 : i32
    %24 = vector.broadcast %c0_i32_9 : i32 to vector<16x16xi32>
    %25 = arith.cmpi ne, %23, %24 : vector<16x16xi32>
    %c0_i32_10 = arith.constant 0 : i32
    %26 = vector.broadcast %c0_i32_10 : i32 to vector<16x16xi32>
    %27 = arith.cmpi slt, %23, %26 : vector<16x16xi32>
    %c0_i32_11 = arith.constant 0 : i32
    %28 = arith.cmpi slt, %21, %c0_i32_11 : i32
    %29 = vector.broadcast %28 : i1 to vector<16x16xi1>
    %30 = vector.broadcast %29 : vector<16x16xi1> to vector<16x16xi1>
    %31 = arith.xori %27, %30 : vector<16x16xi1>
    %32 = arith.andi %31, %25 : vector<16x16xi1>
    %33 = vector.broadcast %21 : i32 to vector<16x16xi32>
    %34 = arith.addi %23, %33 : vector<16x16xi32>
    %35 = arith.select %32, %34, %23 : vector<16x16xi1>, vector<16x16xi32>
    %36 = arith.cmpi eq, %19, %35 : vector<16x16xi32>
    %cst = arith.constant 0.000000e+00 : f32
    %cst_12 = arith.constant -1.000000e+09 : f32
    %37 = vector.broadcast %cst : f32 to vector<16x16xf32>
    %38 = vector.broadcast %cst_12 : f32 to vector<16x16xf32>
    %39 = arith.select %36, %37, %38 : vector<16x16xi1>, vector<16x16xf32>
    %40 = vector.shape_cast %39 : vector<16x16xf32> to vector<1x16x16xf32>
    %c0_13 = arith.constant 0 : index
    %c0_14 = arith.constant 0 : index
    %c0_15 = arith.constant 0 : index
    %41 = vector.load %arg2[%c0_13, %c0_14, %c0_15] : memref<2x32x256xf32, #tpu.memory_space<vmem>>, vector<1x32x256xf32>
    %42 = vector.shape_cast %41 : vector<1x32x256xf32> to vector<32x256xf32>
    %c0_16 = arith.constant 0 : index
    %c0_17 = arith.constant 0 : index
    %c0_18 = arith.constant 0 : index
    %43 = vector.load %arg3[%c0_16, %c0_17, %c0_18] : memref<2x16x64xf32, #tpu.memory_space<vmem>>, vector<1x16x64xf32>
    %44 = vector.shape_cast %43 : vector<1x16x64xf32> to vector<16x64xf32>
    %45 = vector.extract_strided_slice %42 {offsets = [0, 0], sizes = [32, 64], strides = [1, 1]} : vector<32x256xf32> to vector<32x64xf32>
    %46 = vector.extract_strided_slice %42 {offsets = [0, 64], sizes = [32, 32], strides = [1, 1]} : vector<32x256xf32> to vector<32x32xf32>
    %47 = vector.extract_strided_slice %42 {offsets = [0, 96], sizes = [32, 32], strides = [1, 1]} : vector<32x256xf32> to vector<32x32xf32>
    %48 = vector.extract_strided_slice %42 {offsets = [0, 128], sizes = [32, 64], strides = [1, 1]} : vector<32x256xf32> to vector<32x64xf32>
    %49 = vector.extract_strided_slice %42 {offsets = [0, 192], sizes = [32, 64], strides = [1, 1]} : vector<32x256xf32> to vector<32x64xf32>
    %50 = vector.extract_strided_slice %44 {offsets = [0, 0], sizes = [1, 64], strides = [1, 1]} : vector<16x64xf32> to vector<1x64xf32>
    %51 = vector.extract_strided_slice %44 {offsets = [1, 0], sizes = [1, 64], strides = [1, 1]} : vector<16x64xf32> to vector<1x64xf32>
    %52 = vector.extract_strided_slice %44 {offsets = [2, 0], sizes = [1, 32], strides = [1, 1]} : vector<16x64xf32> to vector<1x32xf32>
    %53 = vector.extract_strided_slice %44 {offsets = [3, 0], sizes = [1, 32], strides = [1, 1]} : vector<16x64xf32> to vector<1x32xf32>
    %54 = vector.extract_strided_slice %44 {offsets = [4, 0], sizes = [1, 32], strides = [1, 1]} : vector<16x64xf32> to vector<1x32xf32>
    %55 = vector.extract_strided_slice %44 {offsets = [5, 0], sizes = [1, 32], strides = [1, 1]} : vector<16x64xf32> to vector<1x32xf32>
    %56 = vector.extract_strided_slice %44 {offsets = [6, 0], sizes = [1, 32], strides = [1, 1]} : vector<16x64xf32> to vector<1x32xf32>
    %57 = vector.extract_strided_slice %44 {offsets = [7, 0], sizes = [1, 32], strides = [1, 1]} : vector<16x64xf32> to vector<1x32xf32>
    %58 = vector.extract_strided_slice %44 {offsets = [8, 0], sizes = [1, 32], strides = [1, 1]} : vector<16x64xf32> to vector<1x32xf32>
    %59 = arith.addf %0, %1 : vector<16x32xf32>
    %cst_19 = arith.constant dense<0.000000e+00> : vector<16x64xf32>
    %60 = tpu.matmul %59, %45, %cst_19 {dimension_numbers = #tpu.dot_dimension_numbers<[1], [0], [0], [1], [0, 0, 1, 1], [], []>} : vector<16x32xf32>, vector<32x64xf32>, vector<16x64xf32> -> vector<16x64xf32>
    %61 = vector.broadcast %50 : vector<1x64xf32> to vector<16x64xf32>
    %62 = arith.addf %60, %61 : vector<16x64xf32>
    %cst_20 = arith.constant dense<0.000000e+00> : vector<16x32xf32>
    %63 = tpu.matmul %0, %46, %cst_20 {dimension_numbers = #tpu.dot_dimension_numbers<[1], [0], [0], [1], [0, 0, 1, 1], [], []>} : vector<16x32xf32>, vector<32x32xf32>, vector<16x32xf32> -> vector<16x32xf32>
    %64 = vector.broadcast %52 : vector<1x32xf32> to vector<16x32xf32>
    %65 = arith.addf %63, %64 : vector<16x32xf32>
    %66 = vector.extract_strided_slice %62 {offsets = [0, 0], sizes = [16, 8], strides = [1, 1]} : vector<16x64xf32> to vector<16x8xf32>
    %67 = vector.extract_strided_slice %62 {offsets = [0, 8], sizes = [16, 8], strides = [1, 1]} : vector<16x64xf32> to vector<16x8xf32>
    %68 = vector.extract_strided_slice %62 {offsets = [0, 16], sizes = [16, 8], strides = [1, 1]} : vector<16x64xf32> to vector<16x8xf32>
    %69 = vector.extract_strided_slice %62 {offsets = [0, 24], sizes = [16, 8], strides = [1, 1]} : vector<16x64xf32> to vector<16x8xf32>
    %70 = vector.shape_cast %66 : vector<16x8xf32> to vector<1x16x8xf32>
    %71 = vector.shape_cast %67 : vector<16x8xf32> to vector<1x16x8xf32>
    %72 = vector.shape_cast %68 : vector<16x8xf32> to vector<1x16x8xf32>
    %73 = vector.shape_cast %69 : vector<16x8xf32> to vector<1x16x8xf32>
    %74 = tpu.concatenate %70, %71, %72, %73 in 0 : vector<1x16x8xf32>, vector<1x16x8xf32>, vector<1x16x8xf32>, vector<1x16x8xf32> -> vector<4x16x8xf32>
    %75 = vector.extract_strided_slice %62 {offsets = [0, 32], sizes = [16, 8], strides = [1, 1]} : vector<16x64xf32> to vector<16x8xf32>
    %76 = vector.extract_strided_slice %62 {offsets = [0, 40], sizes = [16, 8], strides = [1, 1]} : vector<16x64xf32> to vector<16x8xf32>
    %77 = vector.extract_strided_slice %62 {offsets = [0, 48], sizes = [16, 8], strides = [1, 1]} : vector<16x64xf32> to vector<16x8xf32>
    %78 = vector.extract_strided_slice %62 {offsets = [0, 56], sizes = [16, 8], strides = [1, 1]} : vector<16x64xf32> to vector<16x8xf32>
    %79 = vector.shape_cast %75 : vector<16x8xf32> to vector<1x16x8xf32>
    %80 = vector.shape_cast %76 : vector<16x8xf32> to vector<1x16x8xf32>
    %81 = vector.shape_cast %77 : vector<16x8xf32> to vector<1x16x8xf32>
    %82 = vector.shape_cast %78 : vector<16x8xf32> to vector<1x16x8xf32>
    %83 = tpu.concatenate %79, %80, %81, %82 in 0 : vector<1x16x8xf32>, vector<1x16x8xf32>, vector<1x16x8xf32>, vector<1x16x8xf32> -> vector<4x16x8xf32>
    %84 = vector.extract_strided_slice %65 {offsets = [0, 0], sizes = [16, 8], strides = [1, 1]} : vector<16x32xf32> to vector<16x8xf32>
    %85 = vector.extract_strided_slice %65 {offsets = [0, 8], sizes = [16, 8], strides = [1, 1]} : vector<16x32xf32> to vector<16x8xf32>
    %86 = vector.extract_strided_slice %65 {offsets = [0, 16], sizes = [16, 8], strides = [1, 1]} : vector<16x32xf32> to vector<16x8xf32>
    %87 = vector.extract_strided_slice %65 {offsets = [0, 24], sizes = [16, 8], strides = [1, 1]} : vector<16x32xf32> to vector<16x8xf32>
    %88 = vector.shape_cast %84 : vector<16x8xf32> to vector<1x16x8xf32>
    %89 = vector.shape_cast %85 : vector<16x8xf32> to vector<1x16x8xf32>
    %90 = vector.shape_cast %86 : vector<16x8xf32> to vector<1x16x8xf32>
    %91 = vector.shape_cast %87 : vector<16x8xf32> to vector<1x16x8xf32>
    %92 = tpu.concatenate %88, %89, %90, %91 in 0 : vector<1x16x8xf32>, vector<1x16x8xf32>, vector<1x16x8xf32>, vector<1x16x8xf32> -> vector<4x16x8xf32>
    "tpu.trace_start"() <{level = 10 : i32, message = "hqd,hkd->hqk"}> : () -> ()
    %cst_21 = arith.constant dense<0.000000e+00> : vector<4x16x16xf32>
    %93 = tpu.matmul %74, %83, %cst_21 {dimension_numbers = #tpu.dot_dimension_numbers<[2], [2], [1], [1], [0, 0, 0, 1, 1, 1], [0], [0]>} : vector<4x16x8xf32>, vector<4x16x8xf32>, vector<4x16x16xf32> -> vector<4x16x16xf32>
    "tpu.trace_stop"() : () -> ()
    %94 = vector.broadcast %40 : vector<1x16x16xf32> to vector<4x16x16xf32>
    %95 = arith.addf %93, %94 : vector<4x16x16xf32>
    %cst_22 = arith.constant dense<0xFF800000> : vector<4x16xf32>
    %96 = vector.multi_reduction <maximumf>, %95, %cst_22 [2] : vector<4x16x16xf32> to vector<4x16xf32>
    %97 = vector.shape_cast %96 : vector<4x16xf32> to vector<4x16x1xf32>
    %98 = vector.broadcast %97 : vector<4x16x1xf32> to vector<4x16x16xf32>
    %99 = arith.subf %95, %98 : vector<4x16x16xf32>
    %100 = math.exp %99 : vector<4x16x16xf32>
    %cst_23 = arith.constant dense<0.000000e+00> : vector<4x16xf32>
    %101 = vector.multi_reduction <add>, %100, %cst_23 [2] : vector<4x16x16xf32> to vector<4x16xf32>
    %102 = vector.shape_cast %101 : vector<4x16xf32> to vector<4x16x1xf32>
    %103 = tpu.reciprocal %102 {approx = true} : vector<4x16x1xf32> -> vector<4x16x1xf32>
    %104 = vector.broadcast %103 : vector<4x16x1xf32> to vector<4x16x16xf32>
    %105 = arith.mulf %100, %104 : vector<4x16x16xf32>
    "tpu.trace_start"() <{level = 10 : i32, message = "hqk,hkd->hqd"}> : () -> ()
    %cst_24 = arith.constant dense<0.000000e+00> : vector<4x16x8xf32>
    %106 = tpu.matmul %105, %92, %cst_24 {dimension_numbers = #tpu.dot_dimension_numbers<[2], [1], [1], [2], [0, 0, 0, 1, 1, 2], [0], [0]>} : vector<4x16x16xf32>, vector<4x16x8xf32>, vector<4x16x8xf32> -> vector<4x16x8xf32>
    "tpu.trace_stop"() : () -> ()
    %107 = vector.extract_strided_slice %106 {offsets = [0, 0, 0], sizes = [1, 16, 8], strides = [1, 1, 1]} : vector<4x16x8xf32> to vector<1x16x8xf32>
    %108 = vector.shape_cast %107 : vector<1x16x8xf32> to vector<16x8xf32>
    %109 = vector.extract_strided_slice %106 {offsets = [1, 0, 0], sizes = [1, 16, 8], strides = [1, 1, 1]} : vector<4x16x8xf32> to vector<1x16x8xf32>
    %110 = vector.shape_cast %109 : vector<1x16x8xf32> to vector<16x8xf32>
    %111 = vector.extract_strided_slice %106 {offsets = [2, 0, 0], sizes = [1, 16, 8], strides = [1, 1, 1]} : vector<4x16x8xf32> to vector<1x16x8xf32>
    %112 = vector.shape_cast %111 : vector<1x16x8xf32> to vector<16x8xf32>
    %113 = vector.extract_strided_slice %106 {offsets = [3, 0, 0], sizes = [1, 16, 8], strides = [1, 1, 1]} : vector<4x16x8xf32> to vector<1x16x8xf32>
    %114 = vector.shape_cast %113 : vector<1x16x8xf32> to vector<16x8xf32>
    %115 = tpu.concatenate %108, %110, %112, %114 in 1 : vector<16x8xf32>, vector<16x8xf32>, vector<16x8xf32>, vector<16x8xf32> -> vector<16x32xf32>
    %cst_25 = arith.constant dense<0.000000e+00> : vector<16x32xf32>
    %116 = tpu.matmul %115, %47, %cst_25 {dimension_numbers = #tpu.dot_dimension_numbers<[1], [0], [0], [1], [0, 0, 1, 1], [], []>} : vector<16x32xf32>, vector<32x32xf32>, vector<16x32xf32> -> vector<16x32xf32>
    %117 = vector.broadcast %53 : vector<1x32xf32> to vector<16x32xf32>
    %118 = arith.addf %116, %117 : vector<16x32xf32>
    %119 = arith.addf %0, %118 : vector<16x32xf32>
    %cst_26 = arith.constant dense<0.000000e+00> : vector<16xf32>
    %120 = vector.multi_reduction <add>, %119, %cst_26 [1] : vector<16x32xf32> to vector<16xf32>
    %121 = vector.shape_cast %120 : vector<16xf32> to vector<16x1xf32>
    %cst_27 = arith.constant 3.200000e+01 : f32
    %122 = vector.broadcast %cst_27 : f32 to vector<16x1xf32>
    %123 = arith.divf %121, %122 : vector<16x1xf32>
    %124 = vector.broadcast %123 : vector<16x1xf32> to vector<16x32xf32>
    %125 = arith.subf %119, %124 : vector<16x32xf32>
    %126 = arith.mulf %125, %125 : vector<16x32xf32>
    %cst_28 = arith.constant dense<0.000000e+00> : vector<16xf32>
    %127 = vector.multi_reduction <add>, %126, %cst_28 [1] : vector<16x32xf32> to vector<16xf32>
    %128 = vector.shape_cast %127 : vector<16xf32> to vector<16x1xf32>
    %cst_29 = arith.constant 3.200000e+01 : f32
    %129 = vector.broadcast %cst_29 : f32 to vector<16x1xf32>
    %130 = arith.divf %128, %129 : vector<16x1xf32>
    %131 = vector.broadcast %123 : vector<16x1xf32> to vector<16x32xf32>
    %132 = arith.subf %119, %131 : vector<16x32xf32>
    %cst_30 = arith.constant 9.99999974E-6 : f32
    %133 = vector.broadcast %cst_30 : f32 to vector<16x1xf32>
    %134 = arith.addf %130, %133 : vector<16x1xf32>
    %135 = math.rsqrt %134 : vector<16x1xf32>
    %136 = vector.broadcast %135 : vector<16x1xf32> to vector<16x32xf32>
    %137 = arith.mulf %132, %136 : vector<16x32xf32>
    %138 = vector.broadcast %55 : vector<1x32xf32> to vector<16x32xf32>
    %139 = arith.mulf %137, %138 : vector<16x32xf32>
    %140 = vector.broadcast %56 : vector<1x32xf32> to vector<16x32xf32>
    %141 = arith.addf %139, %140 : vector<16x32xf32>
    %cst_31 = arith.constant dense<0.000000e+00> : vector<16x64xf32>
    %142 = tpu.matmul %141, %48, %cst_31 {dimension_numbers = #tpu.dot_dimension_numbers<[1], [0], [0], [1], [0, 0, 1, 1], [], []>} : vector<16x32xf32>, vector<32x64xf32>, vector<16x64xf32> -> vector<16x64xf32>
    %143 = vector.broadcast %51 : vector<1x64xf32> to vector<16x64xf32>
    %144 = arith.addf %142, %143 : vector<16x64xf32>
    %cst_32 = arith.constant 0.000000e+00 : f32
    %145 = vector.broadcast %cst_32 : f32 to vector<16x64xf32>
    %146 = arith.maximumf %144, %145 : vector<16x64xf32>
    %cst_33 = arith.constant dense<0.000000e+00> : vector<16x32xf32>
    %147 = tpu.matmul %146, %49, %cst_33 {dimension_numbers = #tpu.dot_dimension_numbers<[1], [1], [0], [0], [0, 0, 1, 0], [], []>} : vector<16x64xf32>, vector<32x64xf32>, vector<16x32xf32> -> vector<16x32xf32>
    %148 = vector.broadcast %54 : vector<1x32xf32> to vector<16x32xf32>
    %149 = arith.addf %147, %148 : vector<16x32xf32>
    %150 = arith.addf %141, %149 : vector<16x32xf32>
    %cst_34 = arith.constant dense<0.000000e+00> : vector<16xf32>
    %151 = vector.multi_reduction <add>, %150, %cst_34 [1] : vector<16x32xf32> to vector<16xf32>
    %152 = vector.shape_cast %151 : vector<16xf32> to vector<16x1xf32>
    %cst_35 = arith.constant 3.200000e+01 : f32
    %153 = vector.broadcast %cst_35 : f32 to vector<16x1xf32>
    %154 = arith.divf %152, %153 : vector<16x1xf32>
    %155 = vector.broadcast %154 : vector<16x1xf32> to vector<16x32xf32>
    %156 = arith.subf %150, %155 : vector<16x32xf32>
    %157 = arith.mulf %156, %156 : vector<16x32xf32>
    %cst_36 = arith.constant dense<0.000000e+00> : vector<16xf32>
    %158 = vector.multi_reduction <add>, %157, %cst_36 [1] : vector<16x32xf32> to vector<16xf32>
    %159 = vector.shape_cast %158 : vector<16xf32> to vector<16x1xf32>
    %cst_37 = arith.constant 3.200000e+01 : f32
    %160 = vector.broadcast %cst_37 : f32 to vector<16x1xf32>
    %161 = arith.divf %159, %160 : vector<16x1xf32>
    %162 = vector.broadcast %154 : vector<16x1xf32> to vector<16x32xf32>
    %163 = arith.subf %150, %162 : vector<16x32xf32>
    %cst_38 = arith.constant 9.99999974E-6 : f32
    %164 = vector.broadcast %cst_38 : f32 to vector<16x1xf32>
    %165 = arith.addf %161, %164 : vector<16x1xf32>
    %166 = math.rsqrt %165 : vector<16x1xf32>
    %167 = vector.broadcast %166 : vector<16x1xf32> to vector<16x32xf32>
    %168 = arith.mulf %163, %167 : vector<16x32xf32>
    %169 = vector.broadcast %57 : vector<1x32xf32> to vector<16x32xf32>
    %170 = arith.mulf %168, %169 : vector<16x32xf32>
    %171 = vector.broadcast %58 : vector<1x32xf32> to vector<16x32xf32>
    %172 = arith.addf %170, %171 : vector<16x32xf32>
    %c1 = arith.constant 1 : index
    %c0_39 = arith.constant 0 : index
    %c0_40 = arith.constant 0 : index
    %173 = vector.load %arg2[%c1, %c0_39, %c0_40] : memref<2x32x256xf32, #tpu.memory_space<vmem>>, vector<1x32x256xf32>
    %174 = vector.shape_cast %173 : vector<1x32x256xf32> to vector<32x256xf32>
    %c1_41 = arith.constant 1 : index
    %c0_42 = arith.constant 0 : index
    %c0_43 = arith.constant 0 : index
    %175 = vector.load %arg3[%c1_41, %c0_42, %c0_43] : memref<2x16x64xf32, #tpu.memory_space<vmem>>, vector<1x16x64xf32>
    %176 = vector.shape_cast %175 : vector<1x16x64xf32> to vector<16x64xf32>
    %177 = vector.extract_strided_slice %174 {offsets = [0, 0], sizes = [32, 64], strides = [1, 1]} : vector<32x256xf32> to vector<32x64xf32>
    %178 = vector.extract_strided_slice %174 {offsets = [0, 64], sizes = [32, 32], strides = [1, 1]} : vector<32x256xf32> to vector<32x32xf32>
    %179 = vector.extract_strided_slice %174 {offsets = [0, 96], sizes = [32, 32], strides = [1, 1]} : vector<32x256xf32> to vector<32x32xf32>
    %180 = vector.extract_strided_slice %174 {offsets = [0, 128], sizes = [32, 64], strides = [1, 1]} : vector<32x256xf32> to vector<32x64xf32>
    %181 = vector.extract_strided_slice %174 {offsets = [0, 192], sizes = [32, 64], strides = [1, 1]} : vector<32x256xf32> to vector<32x64xf32>
    %182 = vector.extract_strided_slice %176 {offsets = [0, 0], sizes = [1, 64], strides = [1, 1]} : vector<16x64xf32> to vector<1x64xf32>
    %183 = vector.extract_strided_slice %176 {offsets = [1, 0], sizes = [1, 64], strides = [1, 1]} : vector<16x64xf32> to vector<1x64xf32>
    %184 = vector.extract_strided_slice %176 {offsets = [2, 0], sizes = [1, 32], strides = [1, 1]} : vector<16x64xf32> to vector<1x32xf32>
    %185 = vector.extract_strided_slice %176 {offsets = [3, 0], sizes = [1, 32], strides = [1, 1]} : vector<16x64xf32> to vector<1x32xf32>
    %186 = vector.extract_strided_slice %176 {offsets = [4, 0], sizes = [1, 32], strides = [1, 1]} : vector<16x64xf32> to vector<1x32xf32>
    %187 = vector.extract_strided_slice %176 {offsets = [5, 0], sizes = [1, 32], strides = [1, 1]} : vector<16x64xf32> to vector<1x32xf32>
    %188 = vector.extract_strided_slice %176 {offsets = [6, 0], sizes = [1, 32], strides = [1, 1]} : vector<16x64xf32> to vector<1x32xf32>
    %189 = vector.extract_strided_slice %176 {offsets = [7, 0], sizes = [1, 32], strides = [1, 1]} : vector<16x64xf32> to vector<1x32xf32>
    %190 = vector.extract_strided_slice %176 {offsets = [8, 0], sizes = [1, 32], strides = [1, 1]} : vector<16x64xf32> to vector<1x32xf32>
    %191 = arith.addf %172, %1 : vector<16x32xf32>
    %cst_44 = arith.constant dense<0.000000e+00> : vector<16x64xf32>
    %192 = tpu.matmul %191, %177, %cst_44 {dimension_numbers = #tpu.dot_dimension_numbers<[1], [0], [0], [1], [0, 0, 1, 1], [], []>} : vector<16x32xf32>, vector<32x64xf32>, vector<16x64xf32> -> vector<16x64xf32>
    %193 = vector.broadcast %182 : vector<1x64xf32> to vector<16x64xf32>
    %194 = arith.addf %192, %193 : vector<16x64xf32>
    %cst_45 = arith.constant dense<0.000000e+00> : vector<16x32xf32>
    %195 = tpu.matmul %172, %178, %cst_45 {dimension_numbers = #tpu.dot_dimension_numbers<[1], [0], [0], [1], [0, 0, 1, 1], [], []>} : vector<16x32xf32>, vector<32x32xf32>, vector<16x32xf32> -> vector<16x32xf32>
    %196 = vector.broadcast %184 : vector<1x32xf32> to vector<16x32xf32>
    %197 = arith.addf %195, %196 : vector<16x32xf32>
    %198 = vector.extract_strided_slice %194 {offsets = [0, 0], sizes = [16, 8], strides = [1, 1]} : vector<16x64xf32> to vector<16x8xf32>
    %199 = vector.extract_strided_slice %194 {offsets = [0, 8], sizes = [16, 8], strides = [1, 1]} : vector<16x64xf32> to vector<16x8xf32>
    %200 = vector.extract_strided_slice %194 {offsets = [0, 16], sizes = [16, 8], strides = [1, 1]} : vector<16x64xf32> to vector<16x8xf32>
    %201 = vector.extract_strided_slice %194 {offsets = [0, 24], sizes = [16, 8], strides = [1, 1]} : vector<16x64xf32> to vector<16x8xf32>
    %202 = vector.shape_cast %198 : vector<16x8xf32> to vector<1x16x8xf32>
    %203 = vector.shape_cast %199 : vector<16x8xf32> to vector<1x16x8xf32>
    %204 = vector.shape_cast %200 : vector<16x8xf32> to vector<1x16x8xf32>
    %205 = vector.shape_cast %201 : vector<16x8xf32> to vector<1x16x8xf32>
    %206 = tpu.concatenate %202, %203, %204, %205 in 0 : vector<1x16x8xf32>, vector<1x16x8xf32>, vector<1x16x8xf32>, vector<1x16x8xf32> -> vector<4x16x8xf32>
    %207 = vector.extract_strided_slice %194 {offsets = [0, 32], sizes = [16, 8], strides = [1, 1]} : vector<16x64xf32> to vector<16x8xf32>
    %208 = vector.extract_strided_slice %194 {offsets = [0, 40], sizes = [16, 8], strides = [1, 1]} : vector<16x64xf32> to vector<16x8xf32>
    %209 = vector.extract_strided_slice %194 {offsets = [0, 48], sizes = [16, 8], strides = [1, 1]} : vector<16x64xf32> to vector<16x8xf32>
    %210 = vector.extract_strided_slice %194 {offsets = [0, 56], sizes = [16, 8], strides = [1, 1]} : vector<16x64xf32> to vector<16x8xf32>
    %211 = vector.shape_cast %207 : vector<16x8xf32> to vector<1x16x8xf32>
    %212 = vector.shape_cast %208 : vector<16x8xf32> to vector<1x16x8xf32>
    %213 = vector.shape_cast %209 : vector<16x8xf32> to vector<1x16x8xf32>
    %214 = vector.shape_cast %210 : vector<16x8xf32> to vector<1x16x8xf32>
    %215 = tpu.concatenate %211, %212, %213, %214 in 0 : vector<1x16x8xf32>, vector<1x16x8xf32>, vector<1x16x8xf32>, vector<1x16x8xf32> -> vector<4x16x8xf32>
    %216 = vector.extract_strided_slice %197 {offsets = [0, 0], sizes = [16, 8], strides = [1, 1]} : vector<16x32xf32> to vector<16x8xf32>
    %217 = vector.extract_strided_slice %197 {offsets = [0, 8], sizes = [16, 8], strides = [1, 1]} : vector<16x32xf32> to vector<16x8xf32>
    %218 = vector.extract_strided_slice %197 {offsets = [0, 16], sizes = [16, 8], strides = [1, 1]} : vector<16x32xf32> to vector<16x8xf32>
    %219 = vector.extract_strided_slice %197 {offsets = [0, 24], sizes = [16, 8], strides = [1, 1]} : vector<16x32xf32> to vector<16x8xf32>
    %220 = vector.shape_cast %216 : vector<16x8xf32> to vector<1x16x8xf32>
    %221 = vector.shape_cast %217 : vector<16x8xf32> to vector<1x16x8xf32>
    %222 = vector.shape_cast %218 : vector<16x8xf32> to vector<1x16x8xf32>
    %223 = vector.shape_cast %219 : vector<16x8xf32> to vector<1x16x8xf32>
    %224 = tpu.concatenate %220, %221, %222, %223 in 0 : vector<1x16x8xf32>, vector<1x16x8xf32>, vector<1x16x8xf32>, vector<1x16x8xf32> -> vector<4x16x8xf32>
    "tpu.trace_start"() <{level = 10 : i32, message = "hqd,hkd->hqk"}> : () -> ()
    %cst_46 = arith.constant dense<0.000000e+00> : vector<4x16x16xf32>
    %225 = tpu.matmul %206, %215, %cst_46 {dimension_numbers = #tpu.dot_dimension_numbers<[2], [2], [1], [1], [0, 0, 0, 1, 1, 1], [0], [0]>} : vector<4x16x8xf32>, vector<4x16x8xf32>, vector<4x16x16xf32> -> vector<4x16x16xf32>
    "tpu.trace_stop"() : () -> ()
    %226 = vector.broadcast %40 : vector<1x16x16xf32> to vector<4x16x16xf32>
    %227 = arith.addf %225, %226 : vector<4x16x16xf32>
    %cst_47 = arith.constant dense<0xFF800000> : vector<4x16xf32>
    %228 = vector.multi_reduction <maximumf>, %227, %cst_47 [2] : vector<4x16x16xf32> to vector<4x16xf32>
    %229 = vector.shape_cast %228 : vector<4x16xf32> to vector<4x16x1xf32>
    %230 = vector.broadcast %229 : vector<4x16x1xf32> to vector<4x16x16xf32>
    %231 = arith.subf %227, %230 : vector<4x16x16xf32>
    %232 = math.exp %231 : vector<4x16x16xf32>
    %cst_48 = arith.constant dense<0.000000e+00> : vector<4x16xf32>
    %233 = vector.multi_reduction <add>, %232, %cst_48 [2] : vector<4x16x16xf32> to vector<4x16xf32>
    %234 = vector.shape_cast %233 : vector<4x16xf32> to vector<4x16x1xf32>
    %235 = tpu.reciprocal %234 {approx = true} : vector<4x16x1xf32> -> vector<4x16x1xf32>
    %236 = vector.broadcast %235 : vector<4x16x1xf32> to vector<4x16x16xf32>
    %237 = arith.mulf %232, %236 : vector<4x16x16xf32>
    "tpu.trace_start"() <{level = 10 : i32, message = "hqk,hkd->hqd"}> : () -> ()
    %cst_49 = arith.constant dense<0.000000e+00> : vector<4x16x8xf32>
    %238 = tpu.matmul %237, %224, %cst_49 {dimension_numbers = #tpu.dot_dimension_numbers<[2], [1], [1], [2], [0, 0, 0, 1, 1, 2], [0], [0]>} : vector<4x16x16xf32>, vector<4x16x8xf32>, vector<4x16x8xf32> -> vector<4x16x8xf32>
    "tpu.trace_stop"() : () -> ()
    %239 = vector.extract_strided_slice %238 {offsets = [0, 0, 0], sizes = [1, 16, 8], strides = [1, 1, 1]} : vector<4x16x8xf32> to vector<1x16x8xf32>
    %240 = vector.shape_cast %239 : vector<1x16x8xf32> to vector<16x8xf32>
    %241 = vector.extract_strided_slice %238 {offsets = [1, 0, 0], sizes = [1, 16, 8], strides = [1, 1, 1]} : vector<4x16x8xf32> to vector<1x16x8xf32>
    %242 = vector.shape_cast %241 : vector<1x16x8xf32> to vector<16x8xf32>
    %243 = vector.extract_strided_slice %238 {offsets = [2, 0, 0], sizes = [1, 16, 8], strides = [1, 1, 1]} : vector<4x16x8xf32> to vector<1x16x8xf32>
    %244 = vector.shape_cast %243 : vector<1x16x8xf32> to vector<16x8xf32>
    %245 = vector.extract_strided_slice %238 {offsets = [3, 0, 0], sizes = [1, 16, 8], strides = [1, 1, 1]} : vector<4x16x8xf32> to vector<1x16x8xf32>
    %246 = vector.shape_cast %245 : vector<1x16x8xf32> to vector<16x8xf32>
    %247 = tpu.concatenate %240, %242, %244, %246 in 1 : vector<16x8xf32>, vector<16x8xf32>, vector<16x8xf32>, vector<16x8xf32> -> vector<16x32xf32>
    %cst_50 = arith.constant dense<0.000000e+00> : vector<16x32xf32>
    %248 = tpu.matmul %247, %179, %cst_50 {dimension_numbers = #tpu.dot_dimension_numbers<[1], [0], [0], [1], [0, 0, 1, 1], [], []>} : vector<16x32xf32>, vector<32x32xf32>, vector<16x32xf32> -> vector<16x32xf32>
    %249 = vector.broadcast %185 : vector<1x32xf32> to vector<16x32xf32>
    %250 = arith.addf %248, %249 : vector<16x32xf32>
    %251 = arith.addf %172, %250 : vector<16x32xf32>
    %cst_51 = arith.constant dense<0.000000e+00> : vector<16xf32>
    %252 = vector.multi_reduction <add>, %251, %cst_51 [1] : vector<16x32xf32> to vector<16xf32>
    %253 = vector.shape_cast %252 : vector<16xf32> to vector<16x1xf32>
    %cst_52 = arith.constant 3.200000e+01 : f32
    %254 = vector.broadcast %cst_52 : f32 to vector<16x1xf32>
    %255 = arith.divf %253, %254 : vector<16x1xf32>
    %256 = vector.broadcast %255 : vector<16x1xf32> to vector<16x32xf32>
    %257 = arith.subf %251, %256 : vector<16x32xf32>
    %258 = arith.mulf %257, %257 : vector<16x32xf32>
    %cst_53 = arith.constant dense<0.000000e+00> : vector<16xf32>
    %259 = vector.multi_reduction <add>, %258, %cst_53 [1] : vector<16x32xf32> to vector<16xf32>
    %260 = vector.shape_cast %259 : vector<16xf32> to vector<16x1xf32>
    %cst_54 = arith.constant 3.200000e+01 : f32
    %261 = vector.broadcast %cst_54 : f32 to vector<16x1xf32>
    %262 = arith.divf %260, %261 : vector<16x1xf32>
    %263 = vector.broadcast %255 : vector<16x1xf32> to vector<16x32xf32>
    %264 = arith.subf %251, %263 : vector<16x32xf32>
    %cst_55 = arith.constant 9.99999974E-6 : f32
    %265 = vector.broadcast %cst_55 : f32 to vector<16x1xf32>
    %266 = arith.addf %262, %265 : vector<16x1xf32>
    %267 = math.rsqrt %266 : vector<16x1xf32>
    %268 = vector.broadcast %267 : vector<16x1xf32> to vector<16x32xf32>
    %269 = arith.mulf %264, %268 : vector<16x32xf32>
    %270 = vector.broadcast %187 : vector<1x32xf32> to vector<16x32xf32>
    %271 = arith.mulf %269, %270 : vector<16x32xf32>
    %272 = vector.broadcast %188 : vector<1x32xf32> to vector<16x32xf32>
    %273 = arith.addf %271, %272 : vector<16x32xf32>
    %cst_56 = arith.constant dense<0.000000e+00> : vector<16x64xf32>
    %274 = tpu.matmul %273, %180, %cst_56 {dimension_numbers = #tpu.dot_dimension_numbers<[1], [0], [0], [1], [0, 0, 1, 1], [], []>} : vector<16x32xf32>, vector<32x64xf32>, vector<16x64xf32> -> vector<16x64xf32>
    %275 = vector.broadcast %183 : vector<1x64xf32> to vector<16x64xf32>
    %276 = arith.addf %274, %275 : vector<16x64xf32>
    %cst_57 = arith.constant 0.000000e+00 : f32
    %277 = vector.broadcast %cst_57 : f32 to vector<16x64xf32>
    %278 = arith.maximumf %276, %277 : vector<16x64xf32>
    %cst_58 = arith.constant dense<0.000000e+00> : vector<16x32xf32>
    %279 = tpu.matmul %278, %181, %cst_58 {dimension_numbers = #tpu.dot_dimension_numbers<[1], [1], [0], [0], [0, 0, 1, 0], [], []>} : vector<16x64xf32>, vector<32x64xf32>, vector<16x32xf32> -> vector<16x32xf32>
    %280 = vector.broadcast %186 : vector<1x32xf32> to vector<16x32xf32>
    %281 = arith.addf %279, %280 : vector<16x32xf32>
    %282 = arith.addf %273, %281 : vector<16x32xf32>
    %cst_59 = arith.constant dense<0.000000e+00> : vector<16xf32>
    %283 = vector.multi_reduction <add>, %282, %cst_59 [1] : vector<16x32xf32> to vector<16xf32>
    %284 = vector.shape_cast %283 : vector<16xf32> to vector<16x1xf32>
    %cst_60 = arith.constant 3.200000e+01 : f32
    %285 = vector.broadcast %cst_60 : f32 to vector<16x1xf32>
    %286 = arith.divf %284, %285 : vector<16x1xf32>
    %287 = vector.broadcast %286 : vector<16x1xf32> to vector<16x32xf32>
    %288 = arith.subf %282, %287 : vector<16x32xf32>
    %289 = arith.mulf %288, %288 : vector<16x32xf32>
    %cst_61 = arith.constant dense<0.000000e+00> : vector<16xf32>
    %290 = vector.multi_reduction <add>, %289, %cst_61 [1] : vector<16x32xf32> to vector<16xf32>
    %291 = vector.shape_cast %290 : vector<16xf32> to vector<16x1xf32>
    %cst_62 = arith.constant 3.200000e+01 : f32
    %292 = vector.broadcast %cst_62 : f32 to vector<16x1xf32>
    %293 = arith.divf %291, %292 : vector<16x1xf32>
    %294 = vector.broadcast %286 : vector<16x1xf32> to vector<16x32xf32>
    %295 = arith.subf %282, %294 : vector<16x32xf32>
    %cst_63 = arith.constant 9.99999974E-6 : f32
    %296 = vector.broadcast %cst_63 : f32 to vector<16x1xf32>
    %297 = arith.addf %293, %296 : vector<16x1xf32>
    %298 = math.rsqrt %297 : vector<16x1xf32>
    %299 = vector.broadcast %298 : vector<16x1xf32> to vector<16x32xf32>
    %300 = arith.mulf %295, %299 : vector<16x32xf32>
    %301 = vector.broadcast %189 : vector<1x32xf32> to vector<16x32xf32>
    %302 = arith.mulf %300, %301 : vector<16x32xf32>
    %303 = vector.broadcast %190 : vector<1x32xf32> to vector<16x32xf32>
    %304 = arith.addf %302, %303 : vector<16x32xf32>
    %c0_64 = arith.constant 0 : index
    %c0_65 = arith.constant 0 : index
    %305 = vector.load %arg4[%c0_64, %c0_65] : memref<2x32xf32, #tpu.memory_space<vmem>>, vector<2x32xf32>
    %306 = vector.extract_strided_slice %305 {offsets = [0, 0], sizes = [1, 32], strides = [1, 1]} : vector<2x32xf32> to vector<1x32xf32>
    %307 = vector.extract_strided_slice %305 {offsets = [1, 0], sizes = [1, 32], strides = [1, 1]} : vector<2x32xf32> to vector<1x32xf32>
    %cst_66 = arith.constant dense<0.000000e+00> : vector<16xf32>
    %308 = vector.multi_reduction <add>, %304, %cst_66 [1] : vector<16x32xf32> to vector<16xf32>
    %309 = vector.shape_cast %308 : vector<16xf32> to vector<16x1xf32>
    %cst_67 = arith.constant 3.200000e+01 : f32
    %310 = vector.broadcast %cst_67 : f32 to vector<16x1xf32>
    %311 = arith.divf %309, %310 : vector<16x1xf32>
    %312 = vector.broadcast %311 : vector<16x1xf32> to vector<16x32xf32>
    %313 = arith.subf %304, %312 : vector<16x32xf32>
    %314 = arith.mulf %313, %313 : vector<16x32xf32>
    %cst_68 = arith.constant dense<0.000000e+00> : vector<16xf32>
    %315 = vector.multi_reduction <add>, %314, %cst_68 [1] : vector<16x32xf32> to vector<16xf32>
    %316 = vector.shape_cast %315 : vector<16xf32> to vector<16x1xf32>
    %cst_69 = arith.constant 3.200000e+01 : f32
    %317 = vector.broadcast %cst_69 : f32 to vector<16x1xf32>
    %318 = arith.divf %316, %317 : vector<16x1xf32>
    %319 = vector.broadcast %311 : vector<16x1xf32> to vector<16x32xf32>
    %320 = arith.subf %304, %319 : vector<16x32xf32>
    %cst_70 = arith.constant 9.99999974E-6 : f32
    %321 = vector.broadcast %cst_70 : f32 to vector<16x1xf32>
    %322 = arith.addf %318, %321 : vector<16x1xf32>
    %323 = math.rsqrt %322 : vector<16x1xf32>
    %324 = vector.broadcast %323 : vector<16x1xf32> to vector<16x32xf32>
    %325 = arith.mulf %320, %324 : vector<16x32xf32>
    %326 = vector.broadcast %306 : vector<1x32xf32> to vector<16x32xf32>
    %327 = arith.mulf %325, %326 : vector<16x32xf32>
    %328 = vector.broadcast %307 : vector<1x32xf32> to vector<16x32xf32>
    %329 = arith.addf %327, %328 : vector<16x32xf32>
    %c0_71 = arith.constant 0 : index
    %c0_72 = arith.constant 0 : index
    %330 = vector.load %arg5[%c0_71, %c0_72] : memref<16x32xf32, #tpu.memory_space<vmem>>, vector<16x32xf32>
    tpu.vector_store %arg5[%c0_71, %c0_72], %329 {strides = array<i32>} : memref<16x32xf32, #tpu.memory_space<vmem>>, vector<16x32xf32>,
    return
  }
}

</mosaic_0001>

<bundles_post_ra>
// kernel: tpu_custom_call.1
= control target key start
LH: loop header
LB: loop body
LE: loop exit
PB: predicated region body
PF: predicated region fallthrough
CT: control target
= control target key end

     0   :  { %10 = vsyncpa [#allocation3], 0  ;;  %s4428_s0 = inlined_call_operand.hbm [shape: f32[16,32], index: 0, kind: input, shape index: {}]   ;;  %s4429_s1 = inlined_call_operand.hbm [shape: f32[16,32], index: 1, kind: input, shape index: {}]   ;;  %s4430_s2 = inlined_call_operand.hbm [shape: f32[2,32,256], index: 2, kind: input, shape index: {}]   ;;  %s4431_s3 = inlined_call_operand.hbm [shape: f32[2,16,64], index: 3, kind: input, shape index: {}]   ;;  %s4432_s4 = inlined_call_operand.vmem [shape: f32[2,32], index: 4, kind: input, shape index: {}]   ;;  %s4433_s5 = inlined_call_operand.hbm [shape: f32[16,32], index: 5, kind: output, shape index: {}]  }
   0x1   :  { %11 = vsyncpa [#allocation6], 0 }
   0x2   :  { %12 = vsyncpa [#allocation9], 0 }
   0x3   :  { %13 = vsyncpa [#allocation4], 0  ;;  %s3914_s18 = smov [#allocation5]   ;;  %s3915_s20 = smov [#allocation2]  }
   0x4   :  { %s31_s19 = sshll.u32 %s3914_s18, 4  ;;  %s19_s21 = sshll.u32 %s3915_s20, 4  ;;  %s32_s19 = int_to_ptr.vmem [resolvable:$true] %s31_s19  ;;  %s3961_s21 = int_to_ptr.vmem [resolvable:$true] %s19_s21 }
   0x5   :  { %s3796_s24 = scalar_lea.hbm %s4429_s1, 256 }
   0x6   :  { %p3797_p0 = scmp.ne.s32.totalorder %s4429_s1, %s3796_s24  ;;  %p3800_p1 = scmp.lt.u32.totalorder %s3796_s24, %s4429_s1 }
   0x8   :  { %p3802_p2 = pnand %p3800_p1, %p3797_p0 }
   0xa   :  { %3805 = shalt.err (!%p3802_p2)
}
   0xb   :  { %s3806_s29 = scalar_lea.vmem %s32_s19, 256  ;;  %p3811_p4 = scmp.lt.s32.totalorder %s32_s19, %s32_s19 }
   0xc   :  { %p3807_p3 = scmp.ne.s32.totalorder %s32_s19, %s3806_s29  ;;  %p3812_p5 = scmp.lt.s32.totalorder %s3806_s29, %s3806_s29 }
   0xe   :  { %p3813_p6 = por %p3812_p5, %p3811_p4 }
  0x10   :  { %p3814_p7 = pnand %p3813_p6, %p3807_p3 }
  0x12   :  { %3817 = shalt.err (!%p3814_p7)
}
  0x13   :  { %s3916_s30 = smov 128   ;;  %s3917_s6 = smov 8  }
  0x14   :  { %37 = dma.hbm_to_vmem [thread:$0]  %s4429_s1, 256, %s32_s19, [#allocation6], %s3916_s30, %s3916_s30, %s3917_s6  }
  0x15   :  { %s3818_s11 = scalar_lea.hbm %s4428_s0, 256 }
  0x16   :  { %p3819_p8 = scmp.ne.s32.totalorder %s4428_s0, %s3818_s11  ;;  %p3822_p9 = scmp.lt.u32.totalorder %s3818_s11, %s4428_s0 }
  0x18   :  { %p3824_p10 = pnand %p3822_p9, %p3819_p8 }
  0x1a   :  { %3827 = shalt.err (!%p3824_p10)
}
  0x1b   :  { %s3828_s16 = scalar_lea.vmem %s3961_s21, 256  ;;  %p3833_p12 = scmp.lt.s32.totalorder %s3961_s21, %s3961_s21 }
  0x1c   :  { %p3829_p11 = scmp.ne.s32.totalorder %s3961_s21, %s3828_s16  ;;  %p3834_p13 = scmp.lt.s32.totalorder %s3828_s16, %s3828_s16 }
  0x1e   :  { %p3835_p0 = por %p3834_p13, %p3833_p12 }
  0x20   :  { %p3836_p1 = pnand %p3835_p0, %p3829_p11 }
  0x22   :  { %3839 = shalt.err (!%p3836_p1)
}
  0x23   :  { %25 = dma.hbm_to_vmem [thread:$0]  %s4428_s0, 256, %s3961_s21, [#allocation3], %s3916_s30, %s3916_s30, %s3917_s6  }
  0x24   :  { %s3918_s18 = smov [#allocation7]   ;;  %s3840_s23 = scalar_lea.hbm %s4430_s2, 2048 }
  0x25   :  { %s43_s19 = sshll.u32 %s3918_s18, 4  ;;  %p3841_p2 = scmp.ne.s32.totalorder %s4430_s2, %s3840_s23  ;;  %s44_s19 = int_to_ptr.vmem [resolvable:$true] %s43_s19 }
  0x26   :  { %p3844_p3 = scmp.lt.u32.totalorder %s3840_s23, %s4430_s2 }
  0x28   :  { %p3846_p4 = pnand %p3844_p3, %p3841_p2 }
  0x2a   :  { %3849 = shalt.err (!%p3846_p4)
}
  0x2b   :  { %s3850_s28 = scalar_lea.vmem %s44_s19, 2048  ;;  %p3855_p6 = scmp.lt.s32.totalorder %s44_s19, %s44_s19 }
  0x2c   :  { %p3851_p5 = scmp.ne.s32.totalorder %s44_s19, %s3850_s28  ;;  %p3856_p7 = scmp.lt.s32.totalorder %s3850_s28, %s3850_s28 }
  0x2e   :  { %p3857_p8 = por %p3856_p7, %p3855_p6 }
  0x30   :  { %p3858_p9 = pnand %p3857_p8, %p3851_p5 }
  0x32   :  { %3861 = shalt.err (!%p3858_p9)
}
  0x33   :  { %s3919_s0 = smov 256   ;;  %s3920_s21 = smov 16  }
  0x34   :  { %49 = dma.hbm_to_vmem [thread:$0]  %s4430_s2, 2048, %s44_s19, [#allocation6], %s3919_s0, %s3919_s0, %s3920_s21  }
  0x35   :  { %s3921_s8 = smov [#allocation8]   ;;  %s3862_s12 = scalar_lea.hbm %s4431_s3, 512 }
  0x36   :  { %s55_s9 = sshll.u32 %s3921_s8, 4  ;;  %p3863_p10 = scmp.ne.s32.totalorder %s4431_s3, %s3862_s12  ;;  %s56_s9 = int_to_ptr.vmem [resolvable:$true] %s55_s9 }
  0x37   :  { %p3866_p11 = scmp.lt.u32.totalorder %s3862_s12, %s4431_s3 }
  0x39   :  { %p3868_p12 = pnand %p3866_p11, %p3863_p10 }
  0x3b   :  { %3871 = shalt.err (!%p3868_p12)
}
  0x3c   :  { %s3872_s1 = scalar_lea.vmem %s56_s9, 512  ;;  %p3877_p0 = scmp.lt.s32.totalorder %s56_s9, %s56_s9 }
  0x3d   :  { %p3873_p13 = scmp.ne.s32.totalorder %s56_s9, %s3872_s1  ;;  %p3878_p1 = scmp.lt.s32.totalorder %s3872_s1, %s3872_s1 }
  0x3f   :  { %p3879_p2 = por %p3878_p1, %p3877_p0 }
  0x41   :  { %p3880_p3 = pnand %p3879_p2, %p3873_p13 }
  0x43   :  { %3883 = shalt.err (!%p3880_p3)
}
  0x44   :  { %61 = dma.hbm_to_vmem [thread:$0]  %s4431_s3, 512, %s56_s9, [#allocation9], %s3916_s30, %s3916_s30, %s3917_s6  }
  0x45   :  { %3906 = dma.done.wait [#allocation3], 256  }
  0x46   :  { %3907 = vsyncadd [#allocation3], 4294967040 }
  0x47   :  { %3908 = dma.done.wait [#allocation6], 2304  }
  0x48   :  { %3909 = vsyncadd [#allocation6], 4294964992 }
  0x49   :  { %3910 = dma.done.wait [#allocation9], 512  }
  0x4a   :  { %3911 = vsyncadd [#allocation9], 4294966784  ;;  %v125_v0 = vld [vmem:[#allocation7] sm:$0xff]  ;;  %v127_v1 = vld [vmem:[#allocation7 + $0x10] sm:$0xff]  ;;  %vm141_vm0 = vcmask 261120   ;;  %v80_v12 = vlaneseq  ;;  %vm362_vm1 = vcmask 64512  }
  0x4b   :  { %v129_v2 = vld [vmem:[#allocation7 + $0x20] sm:$0xff]  ;;  %v3397_v3 = vpack.c.bf16 %v127_v1, %v125_v0  ;;  %v131_v4 = vld [vmem:[#allocation7 + $0x30] sm:$0xff]  ;;  %v4033_v9 = vld [vmem:[#allocation2 + $0x8] sm:$0xff]  ;;  %s3922_s3 = smov 112   ;;  %s3923_s18 = smov 120   ;;  %v4061_v22 = vpack.i.bf16 %v127_v1, %v125_v0  ;;  %vm707_vm5 = vcmask 130048  }
  0x4c   :  { %v4026_v5 = vld [vmem:[#allocation2] sm:$0xff]  ;;  %v4028_v6 = vld [vmem:[#allocation5] sm:$0xff]  ;;  %v3401_v7 = vpack.c.bf16 %v131_v4, %v129_v2  ;;  %v4035_v10 = vld [vmem:[#allocation5 + $0x8] sm:$0xff]  ;;  %v4043_v13 = vshrl.u32 %v80_v12, 7  ;;  %s3924_s19 = smov 104   ;;  %v4058_v21 = vpack.i.bf16 %v131_v4, %v129_v2  ;;  %s3925_s20 = smov 64  }
  0x4d   :  { %v135_v8 = vadd.f32 %v4028_v6, %v4026_v5  ;;  %3398 = vmatprep.subr.bf16.mxu1 %v3397_v3  ;;  %v136_v11 = vadd.f32 %v4035_v10, %v4033_v9  ;;  %v4048_v15 = vld [vmem:[#allocation8] sm:$0xff]  ;;  %s3926_s22 = smov 96   ;;  %vm4073_vm2 = vmpackc.low %vm362_vm1, %vm362_vm1  ;;  %v84_v59 = vand.u32 127, %v80_v12  ;;  %v3927_v4 = vmov -1e+09   ;;  %s3928_s23 = smov 32  }
  0x4e   :  { %3400 = vmatpush3.bf16.msra.mxu1 %v3397_v3  ;;  %v4046_v14 = vsub.s32 0, %v4043_v13  ;;  %v82_v58 = vadd.s32 8, %v4043_v13  ;;  %v225_v60 = vsub.s32 2, %v4043_v13  ;;  %v89_v63 = vand.u32 1, %v4043_v13  ;;  %s3929_s24 = smov 24   ;;  %s3930_s27 = smov [#allocation10]  }
  0x4f   :  { %3183 = vmatprep.mubr.msk.f32.mxu1 %vm141_vm0, %v135_v8  ;;  %3402 = vmatprep.subr.bf16.mxu1 %v3401_v7  ;;  %v113_v62 = vand.u32 1, %v84_v59  ;;  %vm1148_vm6 = vcmask 195584   ;;  %vm1392_vm7 = vcmask 523264   ;;  %s2961_s28 = sshll.u32 %s3930_s27, 4  ;;  %s2962_s28 = int_to_ptr.vmem [resolvable:$true] %s2961_s28 }
  0x50   :  { %v140_v16 = vrot.slane %v4048_v15, %v4046_v14  ;;  %v96_v61 = vand.u32 1, %v82_v58  ;;  %v226_v0 = vrot.slane %v4048_v15, %v225_v60  ;;  %vm4194_vm8 = vmpackc.low %vm1392_vm7, %vm1392_vm7  ;;  %p3889_p5 = scmp.lt.s32.totalorder %s2962_s28, %s2962_s28 }
  0x51   :  { %vm121_vm4 = vcmp.eq.s32.totalorder %v89_v63, %v113_v62 }
  0x52   :  { %3404 = vmatpush3.bf16.msra.mxu1 %v3401_v7  ;;  %vm122_vm3 = vcmp.eq.s32.totalorder %v96_v61, %v113_v62 }
  0x53   :  { %v4109_v7 = vsel %vm122_vm3, 0.0, %v3927_v4 }
  0x55   :  { %3184 = vmatmul.mubr.msk.f32.vlgmr.msra.gmra.mrb[0].mxu1 %vm141_vm0, %v136_v11  ;;  %v4111_v11 = vsel %vm121_vm4, 0.0, %v3927_v4 }
  0x56   :  { %3194 = vmatprep.mubr.msk.f32.mxu1 %vm141_vm0, %v4026_v5 }
 0x128   :  { %v3185_v17 = vpop.f32.mrb[0].mxu1 }
 0x129   :  { %v220_v18 = vadd.f32 %v3185_v17, %v140_v16  ;;  %v214_v19 = vpop.f32.mrb[1].mxu1 }
 0x12a   :  { %v215_v20 = vadd.f32 %v214_v19, %v140_v16 }
 0x12b   :  { %332 = vrot.lane.b32.xlu1 %v220_v18, %s3922_s3 }
 0x12c   :  { %326 = vrot.lane.b32.xlu0 %v215_v20, %s3923_s18  ;;  %3201 = vmatprep.mubr.msk.f32.mxu0 %vm362_vm1, %v215_v20  ;;  %v3592_v23 = vpack.i.bf16 %v220_v18, %v215_v20 }
 0x12f   :  { %330 = vrot.lane.b32.xlu1 %v215_v20, %s3922_s3 }
 0x130   :  { %328 = vrot.lane.b32.xlu0 %v220_v18, %s3923_s18 }
 0x133   :  { %336 = vrot.lane.b32.xlu1 %v220_v18, %s3924_s19 }
 0x134   :  { %334 = vrot.lane.b32.xlu0 %v215_v20, %s3924_s19 }
 0x137   :  { %3588 = vrot.lane.b32.xlu1 %v4058_v21, %s3925_s20 }
 0x138   :  { %3583 = vrot.lane.b32.xlu0 %v4061_v22, %s3925_s20 }
 0x13c   :  { %3593 = vrot.lane.b32.xlu0 %v3592_v23, %s3926_s22 }
 0x19d   :  { %v333_v24 = vpop.permute.xlu1 %332 }
 0x19e   :  { %v327_v25 = vpop.permute.xlu0 %326 }
 0x1a1   :  { %v331_v26 = vpop.permute.xlu1 %330 }
 0x1a2   :  { %v3602_v27 = vpack.i.bf16 %v333_v24, %v331_v26  ;;  %v329_v28 = vpop.permute.xlu0 %328 }
 0x1a3   :  { %v3597_v29 = vpack.i.bf16 %v329_v28, %v327_v25 }
 0x1a4   :  { %3603 = vrot.lane.b32.xlu0 %v3602_v27, %s3926_s22 }
 0x1a5   :  { %v337_v30 = vpop.permute.xlu1 %336  ;;  %3598 = vrot.lane.b32.xlu1 %v3597_v29, %s3926_s22 }
 0x1a6   :  { %v335_v31 = vpop.permute.xlu0 %334 }
 0x1a7   :  { %v3607_v32 = vpack.i.bf16 %v337_v30, %v335_v31 }
 0x1a9   :  { %3608 = vrot.lane.b32.xlu1 %v3607_v32, %s3926_s22  ;;  %v3589_v33 = vpop.permute.xlu1 %3588 }
 0x1aa   :  { %v3584_v34 = vpop.permute.xlu0 %3583  ;;  %v3591_v35 = vunpack.i.h.bf16 %v3589_v33  ;;  %v3590_v36 = vunpack.i.l.bf16 %v3589_v33 }
 0x1ab   :  { %v3586_v37 = vunpack.i.h.bf16 %v3584_v34  ;;  %v3585_v38 = vunpack.i.l.bf16 %v3584_v34 }
 0x1ac   :  { %v3409_v40 = vpack.c.bf16 %v3591_v35, %v3590_v36 }
 0x1ad   :  { %v3405_v39 = vpack.c.bf16 %v3586_v37, %v3585_v38 }
 0x1ae   :  { %v3594_v41 = vpop.permute.xlu0 %3593 }
 0x1af   :  { %v3596_v42 = vunpack.i.h.bf16 %v3594_v41  ;;  %v3595_v43 = vunpack.i.l.bf16 %v3594_v41  ;;  %3406 = vmatprep.subr.bf16.mxu1 %v3405_v39 }
 0x1b0   :  { %3408 = vmatpush3.bf16.msra.mxu1 %v3405_v39 }
 0x1b1   :  { %3410 = vmatprep.subr.bf16.mxu1 %v3409_v40  ;;  %v3413_v45 = vpack.c.bf16 %v3596_v42, %v3595_v43 }
 0x1b3   :  { %3415 = vmatprep.subr.msk.bf16.mxu0 %vm4073_vm2, %v3413_v45 }
 0x1b4   :  { %3412 = vmatpush3.bf16.msra.mxu1 %v3409_v40  ;;  %3418 = vmatpush3.bf16.xpose.msk.msra.mxu0 %vm4073_vm2, %v3413_v45 }
 0x1b7   :  { %3195 = vmatmul.mubr.msk.f32.vlgmr.msra.gmra.mrb[2].mxu1 %vm141_vm0, %v4033_v9 }
 0x1b8   :  { %3208 = vmatprep.mubr.msk.f32.mxu1 %vm362_vm1, %v327_v25 }
 0x1bb   :  { %3202 = vmatmul.mubr.msk.f32.vlgmr.msra.gmra.mrb[0].mxu0 %vm362_vm1, %v220_v18 }
 0x1bc   :  { %3215 = vmatprep.mubr.msk.f32.mxu0 %vm362_vm1, %v331_v26 }
 0x216   :  { %v3604_v46 = vpop.permute.xlu0 %3603 }
 0x217   :  { %v3606_v47 = vunpack.i.h.bf16 %v3604_v46  ;;  %v3605_v48 = vunpack.i.l.bf16 %v3604_v46  ;;  %v3599_v49 = vpop.permute.xlu1 %3598 }
 0x218   :  { %v3601_v50 = vunpack.i.h.bf16 %v3599_v49  ;;  %v3600_v51 = vunpack.i.l.bf16 %v3599_v49 }
 0x219   :  { %v3425_v52 = vpack.c.bf16 %v3606_v47, %v3605_v48 }
 0x21a   :  { %v3419_v53 = vpack.c.bf16 %v3601_v50, %v3600_v51 }
 0x21b   :  { %v3609_v54 = vpop.permute.xlu1 %3608  ;;  %3427 = vmatprep.subr.msk.bf16.mxu0 %vm4073_vm2, %v3425_v52 }
 0x21c   :  { %v3611_v55 = vunpack.i.h.bf16 %v3609_v54  ;;  %v3610_v56 = vunpack.i.l.bf16 %v3609_v54  ;;  %3421 = vmatprep.subr.msk.bf16.mxu1 %vm4073_vm2, %v3419_v53  ;;  %3430 = vmatpush3.bf16.xpose.msk.msra.mxu0 %vm4073_vm2, %v3425_v52 }
 0x21d   :  { %3424 = vmatpush3.bf16.xpose.msk.msra.mxu1 %vm4073_vm2, %v3419_v53 }
 0x21e   :  { %v3431_v57 = vpack.c.bf16 %v3611_v55, %v3610_v56 }
 0x220   :  { %3433 = vmatprep.subr.msk.bf16.mxu1 %vm4073_vm2, %v3431_v57 }
 0x223   :  { %3216 = vmatmul.mubr.msk.f32.vlgmr.msra.gmra.mrb[2].mxu0 %vm362_vm1, %v333_v24 }
 0x224   :  { %3209 = vmatmul.mubr.msk.f32.vlgmr.msra.gmra.mrb[4].mxu1 %vm362_vm1, %v329_v28 }
 0x225   :  { %3436 = vmatpush3.bf16.xpose.msk.msra.mxu1 %vm4073_vm2, %v3431_v57  ;;  %3222 = vmatprep.mubr.msk.f32.mxu1 %vm362_vm1, %v335_v31 }
 0x22c   :  { %3223 = vmatmul.mubr.msk.f32.vlgmr.msra.gmra.mrb[6].mxu1 %vm362_vm1, %v337_v30 }
 0x28a   :  { %v3196_v1 = vpop.f32.mrb[2].mxu1 }
 0x28b   :  { %v321_v2 = vadd.f32 %v3196_v1, %v226_v0  ;;  %v315_v3 = vpop.f32.mrb[3].mxu1 }
 0x28c   :  { %v316_v8 = vadd.f32 %v315_v3, %v226_v0 }
 0x28e   :  { %v3203_v12 = vpop.f32.mrb[0].mxu0  ;;  %v3437_v16 = vpack.c.bf16 %v321_v2, %v316_v8  ;;  %v4113_v17 = vpack.i.bf16 %v321_v2, %v316_v8 }
 0x28f   :  { %v443_v18 = vadd.f32 %v3203_v12, %v4109_v7  ;;  %v437_v19 = vpop.f32.mrb[1].mxu0 }
 0x290   :  { %v438_v20 = vadd.f32 %v437_v19, %v4111_v11  ;;  %3438 = vmatprep.subr.bf16.mxu0 %v3437_v16 }
 0x291   :  { %v711_v23 = vsel %vm707_vm5, %v443_v18, -inf  ;;  %3440 = vmatpush3.bf16.msra.mxu0 %v3437_v16 }
 0x292   :  { %712 = vmax.xlane.f32.xlu1 %v711_v23  ;;  %v708_v24 = vsel %vm707_vm5, %v438_v20, -inf }
 0x293   :  { %709 = vmax.xlane.f32.xlu0 %v708_v24 }
 0x2f6   :  { %v3217_v25 = vpop.f32.mrb[2].mxu0 }
 0x2f7   :  { %v3210_v26 = vpop.f32.mrb[4].mxu1  ;;  %v611_v27 = vpop.f32.mrb[3].mxu0  ;;  %v617_v34 = vadd.f32 %v3217_v25, %v4109_v7 }
 0x2f8   :  { %v530_v28 = vadd.f32 %v3210_v26, %v4109_v7  ;;  %v612_v29 = vadd.f32 %v611_v27, %v4111_v11  ;;  %v524_v30 = vpop.f32.mrb[5].mxu1 }
 0x2f9   :  { %v525_v31 = vadd.f32 %v524_v30, %v4111_v11  ;;  %v723_v40 = vsel %vm707_vm5, %v617_v34, -inf }
 0x2fa   :  { %v720_v32 = vsel %vm707_vm5, %v612_v29, -inf  ;;  %v717_v33 = vsel %vm707_vm5, %v530_v28, -inf }
 0x2fb   :  { %721 = vmax.xlane.f32.xlu1 %v720_v32  ;;  %718 = vmax.xlane.f32.xlu0 %v717_v33  ;;  %v714_v35 = vsel %vm707_vm5, %v525_v31, -inf }
 0x2ff   :  { %v3224_v36 = vpop.f32.mrb[6].mxu1  ;;  %715 = vmax.xlane.f32.xlu0 %v714_v35 }
 0x300   :  { %v698_v37 = vpop.f32.mrb[7].mxu1  ;;  %v704_v39 = vadd.f32 %v3224_v36, %v4109_v7 }
 0x301   :  { %v699_v38 = vadd.f32 %v698_v37, %v4111_v11 }
 0x302   :  { %v729_v42 = vsel %vm707_vm5, %v704_v39, -inf }
 0x303   :  { %724 = vmax.xlane.f32.xlu0 %v723_v40  ;;  %v726_v41 = vsel %vm707_vm5, %v699_v38, -inf }
 0x304   :  { %727 = vmax.xlane.f32.xlu1 %v726_v41 }
 0x307   :  { %730 = vmax.xlane.f32.xlu0 %v729_v42 }
 0x315   :  { %3613 = vrot.lane.b32.xlu1 %v4113_v17, %s3923_s18 }
 0x31f   :  { %v713_v43 = vpop.xlane.xlu1 %712 }
 0x320   :  { %v733_v45 = vsub.f32 %v443_v18, %v713_v43  ;;  %v710_v46 = vpop.xlane.xlu0 %709 }
 0x321   :  { %v732_v48 = vsub.f32 %v438_v20, %v710_v46 }
 0x322   :  { %v742_v47 = vmul.f32 1.442695, %v733_v45 }
 0x323   :  { %v740_v49 = vmul.f32 1.442695, %v732_v48 }
 0x324   :  { %3712 = vpow2.f32 %v742_v47 }
 0x325   :  { %3714 = vpow2.f32 %v740_v49 }
 0x32e   :  { %v4133_v50 = vpop.eup %3712 }
 0x32f   :  { %v759_v51 = vsel %vm707_vm5, %v4133_v50, 0.0  ;;  %v3715_v52 = vpop.eup %3714 }
 0x330   :  { %760 = vadd.xlane.f32.xlu0 %v759_v51  ;;  %v756_v53 = vsel %vm707_vm5, %v3715_v52, 0.0 }
 0x339   :  { %757 = vadd.xlane.f32.xlu1 %v756_v53 }
 0x388   :  { %v722_v54 = vpop.xlane.xlu1 %721  ;;  %v719_v55 = vpop.xlane.xlu0 %718 }
 0x389   :  { %v735_v56 = vsub.f32 %v530_v28, %v719_v55  ;;  %v736_v57 = vsub.f32 %v612_v29, %v722_v54 }
 0x38b   :  { %v746_v58 = vmul.f32 1.442695, %v735_v56  ;;  %v748_v62 = vmul.f32 1.442695, %v736_v57 }
 0x38c   :  { %v716_v59 = vpop.xlane.xlu0 %715 }
 0x38d   :  { %v734_v61 = vsub.f32 %v525_v31, %v716_v59  ;;  %3716 = vpow2.f32 %v746_v58 }
 0x38f   :  { %v744_v63 = vmul.f32 1.442695, %v734_v61 }
 0x390   :  { %v725_v0 = vpop.xlane.xlu0 %724 }
 0x391   :  { %3718 = vpow2.f32 %v744_v63  ;;  %v737_v1 = vsub.f32 %v617_v34, %v725_v0  ;;  %v728_v2 = vpop.xlane.xlu1 %727 }
 0x392   :  { %v738_v3 = vsub.f32 %v699_v38, %v728_v2  ;;  %3720 = vpow2.f32 %v748_v62 }
 0x393   :  { %v750_v4 = vmul.f32 1.442695, %v737_v1 }
 0x394   :  { %v752_v8 = vmul.f32 1.442695, %v738_v3  ;;  %v731_v12 = vpop.xlane.xlu0 %730 }
 0x395   :  { %3722 = vpow2.f32 %v750_v4  ;;  %v739_v16 = vsub.f32 %v704_v39, %v731_v12  ;;  %v3614_v18 = vpop.permute.xlu1 %3613 }
 0x396   :  { %v3616_v19 = vunpack.i.h.bf16 %v3614_v18  ;;  %v3615_v20 = vunpack.i.l.bf16 %v3614_v18  ;;  %3724 = vpow2.f32 %v752_v8 }
 0x397   :  { %v754_v23 = vmul.f32 1.442695, %v739_v16  ;;  %v3717_v24 = vpop.eup %3716 }
 0x398   :  { %v3441_v25 = vpack.c.bf16 %v3616_v19, %v3615_v20  ;;  %v765_v26 = vsel %vm707_vm5, %v3717_v24, 0.0 }
 0x399   :  { %3726 = vpow2.f32 %v754_v23  ;;  %766 = vadd.xlane.f32.xlu0 %v765_v26 }
 0x39a   :  { %3442 = vmatprep.subr.bf16.mxu1 %v3441_v25 }
 0x39b   :  { %v3719_v27 = vpop.eup %3718  ;;  %3444 = vmatpush3.bf16.msra.mxu1 %v3441_v25 }
 0x39c   :  { %v762_v28 = vsel %vm707_vm5, %v3719_v27, 0.0  ;;  %v3721_v29 = vpop.eup %3720 }
 0x39d   :  { %763 = vadd.xlane.f32.xlu1 %v762_v28  ;;  %v768_v31 = vsel %vm707_vm5, %v3721_v29, 0.0 }
 0x39f   :  { %v3723_v30 = vpop.eup %3722 }
 0x3a0   :  { %v771_v32 = vsel %vm707_vm5, %v3723_v30, 0.0  ;;  %v3725_v33 = vpop.eup %3724 }
 0x3a1   :  { %769 = vadd.xlane.f32.xlu1 %v768_v31  ;;  %772 = vadd.xlane.f32.xlu0 %v771_v32  ;;  %v774_v35 = vsel %vm707_vm5, %v3725_v33, 0.0 }
 0x3a3   :  { %v3727_v34 = vpop.eup %3726 }
 0x3a4   :  { %v777_v36 = vsel %vm707_vm5, %v3727_v34, 0.0 }
 0x3a5   :  { %775 = vadd.xlane.f32.xlu1 %v774_v35  ;;  %778 = vadd.xlane.f32.xlu0 %v777_v36 }
 0x3b6   :  { %3623 = vrot.lane.b32.xlu1 %v4113_v17, %s3924_s19 }
 0x3ba   :  { %3628 = vrot.lane.b32.xlu1 %v4061_v22, %s3928_s23 }
 0x3bb   :  { %3618 = vrot.lane.b32.xlu0 %v4113_v17, %s3922_s3 }
 0x3bd   :  { %v761_v37 = vpop.xlane.xlu0 %760 }
 0x3be   :  { %3728 = vrcp.f32 %v761_v37 }
 0x3bf   :  { %3633 = vrot.lane.b32.xlu0 %v4058_v21, %s3928_s23 }
 0x3c6   :  { %v758_v38 = vpop.xlane.xlu1 %757 }
 0x3c7   :  { %3730 = vrcp.f32 %v758_v38 }
 0x3c8   :  { %v3729_v39 = vpop.eup %3728 }
 0x3c9   :  { %v789_v42 = vmul.f32 %v3729_v39, %v4133_v50 }
 0x3d1   :  { %v3731_v40 = vpop.eup %3730 }
 0x3d2   :  { %v788_v41 = vmul.f32 %v3731_v40, %v3715_v52 }
 0x3d4   :  { %3229 = vmatprep.mubr.msk.f32.mxu0 %vm707_vm5, %v788_v41 }
 0x3d5   :  { %3230 = vmatmul.mubr.msk.f32.vlgmr.msra.gmra.mrb[4].mxu0 %vm707_vm5, %v789_v42 }
 0x426   :  { %v767_v43 = vpop.xlane.xlu0 %766 }
 0x427   :  { %3732 = vrcp.f32 %v767_v43 }
 0x42a   :  { %v764_v45 = vpop.xlane.xlu1 %763 }
 0x42b   :  { %3734 = vrcp.f32 %v764_v45  ;;  %v1153_v45 = vsub.s32 3, %v4043_v13 }
 0x42e   :  { %v770_v17 = vpop.xlane.xlu1 %769  ;;  %v773_v46 = vpop.xlane.xlu0 %772 }
 0x42f   :  { %3736 = vrcp.f32 %v770_v17  ;;  %v1154_v17 = vrot.slane %v4048_v15, %v1153_v45 }
 0x430   :  { %3738 = vrcp.f32 %v773_v46 }
 0x431   :  { %v3733_v49 = vpop.eup %3732 }
 0x432   :  { %v776_v47 = vpop.xlane.xlu1 %775  ;;  %v779_v48 = vpop.xlane.xlu0 %778  ;;  %v791_v51 = vmul.f32 %v3733_v49, %v3717_v24 }
 0x433   :  { %3740 = vrcp.f32 %v776_v47 }
 0x434   :  { %3742 = vrcp.f32 %v779_v48 }
 0x435   :  { %v3735_v50 = vpop.eup %3734 }
 0x436   :  { %v3624_v52 = vpop.permute.xlu1 %3623  ;;  %v3619_v53 = vpop.permute.xlu0 %3618  ;;  %v790_v54 = vmul.f32 %v3735_v50, %v3719_v27 }
 0x437   :  { %v3626_v55 = vunpack.i.h.bf16 %v3624_v52  ;;  %v3625_v56 = vunpack.i.l.bf16 %v3624_v52  ;;  %v3621_v22 = vunpack.i.h.bf16 %v3619_v53  ;;  %v3620_v57 = vunpack.i.l.bf16 %v3619_v53 }
 0x438   :  { %3236 = vmatprep.mubr.msk.f32.mxu1 %vm707_vm5, %v790_v54 }
 0x439   :  { %v3737_v21 = vpop.eup %3736  ;;  %v3449_v58 = vpack.c.bf16 %v3626_v55, %v3625_v56  ;;  %v3445_v59 = vpack.c.bf16 %v3621_v22, %v3620_v57  ;;  %3237 = vmatmul.mubr.msk.f32.vlgmr.msra.gmra.mrb[8].mxu1 %vm707_vm5, %v791_v51 }
 0x43a   :  { %v3739_v61 = vpop.eup %3738  ;;  %v792_v62 = vmul.f32 %v3737_v21, %v3721_v29  ;;  %v3629_v4 = vpop.permute.xlu1 %3628 }
 0x43b   :  { %3446 = vmatprep.subr.bf16.mxu0 %v3445_v59  ;;  %3450 = vmatprep.subr.bf16.mxu1 %v3449_v58  ;;  %v793_v0 = vmul.f32 %v3739_v61, %v3723_v30  ;;  %v3634_v8 = vpop.permute.xlu0 %3633  ;;  %v3631_v12 = vunpack.i.h.bf16 %v3629_v4  ;;  %v3630_v16 = vunpack.i.l.bf16 %v3629_v4 }
 0x43c   :  { %3448 = vmatpush3.bf16.msra.mxu0 %v3445_v59  ;;  %3243 = vmatprep.mubr.msk.f32.mxu0 %vm707_vm5, %v792_v62  ;;  %v3636_v18 = vunpack.i.h.bf16 %v3634_v8  ;;  %v3635_v19 = vunpack.i.l.bf16 %v3634_v8  ;;  %v128_v62 = vld [vmem:[#allocation7 + $0x18] sm:$0xff] }
 0x43d   :  { %v3741_v63 = vpop.eup %3740  ;;  %3452 = vmatpush3.bf16.msra.mxu1 %v3449_v58  ;;  %v3453_v20 = vpack.c.bf16 %v3631_v12, %v3630_v16 }
 0x43e   :  { %v3743_v1 = vpop.eup %3742  ;;  %v794_v2 = vmul.f32 %v3741_v63, %v3725_v33  ;;  %v3457_v23 = vpack.c.bf16 %v3636_v18, %v3635_v19 }
 0x43f   :  { %v795_v3 = vmul.f32 %v3743_v1, %v3727_v34  ;;  %3244 = vmatmul.mubr.msk.f32.vlgmr.msra.gmra.mrb[6].mxu0 %vm707_vm5, %v793_v0  ;;  %3454 = vmatprep.subr.bf16.mxu0 %v3453_v20  ;;  %v130_v0 = vld [vmem:[#allocation7 + $0x28] sm:$0xff]  ;;  %v132_v1 = vld [vmem:[#allocation7 + $0x38] sm:$0xff] }
 0x440   :  { %3250 = vmatprep.mubr.msk.f32.mxu1 %vm707_vm5, %v794_v2  ;;  %3456 = vmatpush3.bf16.msra.mxu0 %v3453_v20  ;;  %v3465_v2 = vpack.c.bf16 %v132_v1, %v130_v0  ;;  %v3642_v4 = vpack.i.bf16 %v132_v1, %v130_v0 }
 0x441   :  { %3251 = vmatmul.mubr.msk.f32.vlgmr.msra.gmra.mrb[10].mxu1 %vm707_vm5, %v795_v3  ;;  %3458 = vmatprep.subr.bf16.mxu0 %v3457_v23 }
 0x444   :  { %3460 = vmatpush3.bf16.msra.mxu0 %v3457_v23  ;;  %v1279_v23 = vsub.s32 5, %v4043_v13 }
 0x4a8   :  { %v3231_v24 = vpop.f32.mrb[4].mxu0 }
 0x4a9   :  { %v868_v25 = vpop.f32.mrb[5].mxu0 }
 0x50c   :  { %v3238_v26 = vpop.f32.mrb[8].mxu1 }
 0x50d   :  { %1124 = vrot.lane.b32.xlu0 %v3238_v26, %s3917_s6  ;;  %v949_v27 = vpop.f32.mrb[9].mxu1 }
 0x50e   :  { %1122 = vrot.lane.b32.xlu1 %v949_v27, %s3917_s6 }
 0x512   :  { %v3245_v28 = vpop.f32.mrb[6].mxu0 }
 0x513   :  { %1132 = vrot.lane.b32.xlu0 %v3245_v28, %s3920_s21  ;;  %v1030_v29 = vpop.f32.mrb[7].mxu0 }
 0x514   :  { %v3252_v30 = vpop.f32.mrb[10].mxu1  ;;  %1130 = vrot.lane.b32.xlu1 %v1030_v29, %s3920_s21 }
 0x515   :  { %v1111_v31 = vpop.f32.mrb[11].mxu1 }
 0x517   :  { %1140 = vrot.lane.b32.xlu0 %v3252_v30, %s3929_s24 }
 0x518   :  { %1138 = vrot.lane.b32.xlu1 %v1111_v31, %s3929_s24  ;;  %v1280_v31 = vrot.slane %v4048_v15, %v1279_v23 }
 0x57f   :  { %v1125_v32 = vpop.permute.xlu0 %1124 }
 0x580   :  { %v1123_v33 = vpop.permute.xlu1 %1122  ;;  %v1145_v38 = vsel %vm362_vm1, %v3231_v24, %v1125_v32  ;;  %v1285_v24 = vsub.s32 6, %v4043_v13 }
 0x581   :  { %v1144_v36 = vsel %vm362_vm1, %v868_v25, %v1123_v33 }
 0x585   :  { %v1133_v34 = vpop.permute.xlu0 %1132 }
 0x586   :  { %v1131_v35 = vpop.permute.xlu1 %1130  ;;  %v1147_v41 = vsel %vm707_vm5, %v1145_v38, %v1133_v34 }
 0x587   :  { %v1146_v39 = vsel %vm707_vm5, %v1144_v36, %v1131_v35 }
 0x589   :  { %v1141_v37 = vpop.permute.xlu0 %1140 }
 0x58a   :  { %v1139_v40 = vpop.permute.xlu1 %1138  ;;  %v1150_v43 = vsel %vm1148_vm6, %v1147_v41, %v1141_v37 }
 0x58b   :  { %v1149_v42 = vsel %vm1148_vm6, %v1146_v39, %v1139_v40  ;;  %v1286_v39 = vrot.slane %v4048_v15, %v1285_v24 }
 0x58c   :  { %3261 = vmatprep.mubr.msk.f32.mxu0 %vm141_vm0, %v1149_v42 }
 0x58d   :  { %3262 = vmatmul.mubr.msk.f32.vlgmr.msra.gmra.mrb[8].mxu0 %vm141_vm0, %v1150_v43 }
 0x660   :  { %v3263_v46 = vpop.f32.mrb[8].mxu0 }
 0x661   :  { %v1245_v47 = vadd.f32 %v3263_v46, %v1154_v17  ;;  %v1239_v48 = vpop.f32.mrb[9].mxu0 }
 0x662   :  { %v1240_v49 = vadd.f32 %v1239_v48, %v1154_v17  ;;  %v4212_v17 = vsub.s32 1, %v4043_v13 }
 0x663   :  { %v1249_v50 = vadd.f32 %v1245_v47, %v4033_v9 }
 0x664   :  { %v1248_v51 = vadd.f32 %v1240_v49, %v4026_v5  ;;  %v126_v5 = vld [vmem:[#allocation7 + $0x8] sm:$0xff]  ;;  %v1292_v46 = vrot.slane %v4048_v15, %v4212_v17 }
 0x665   :  { %v1253_v52 = vsel %vm141_vm0, %v1249_v50, 0.0  ;;  %v3461_v63 = vpack.c.bf16 %v128_v62, %v126_v5  ;;  %v3637_v3 = vpack.i.bf16 %v128_v62, %v126_v5 }
 0x666   :  { %1254 = vadd.xlane.f32.xlu0 %v1253_v52  ;;  %v1250_v53 = vsel %vm141_vm0, %v1248_v51, 0.0 }
 0x667   :  { %1251 = vadd.xlane.f32.xlu1 %v1250_v53  ;;  %3462 = vmatprep.subr.bf16.mxu1 %v3461_v63  ;;  %v1378_v53 = vsub.s32 4, %v4043_v13 }
 0x668   :  { %3464 = vmatpush3.bf16.msra.mxu1 %v3461_v63 }
 0x669   :  { %3466 = vmatprep.subr.bf16.mxu1 %v3465_v2 }
 0x66c   :  { %3468 = vmatpush3.bf16.msra.mxu1 %v3465_v2 }
 0x6f3   :  { %v1255_v54 = vpop.xlane.xlu0 %1254 }
 0x6f4   :  { %v1258_v55 = vmul.f32 0.03125, %v1255_v54  ;;  %v1252_v56 = vpop.xlane.xlu1 %1251  ;;  %v1379_v54 = vrot.slane %v4048_v15, %v1378_v53 }
 0x6f5   :  { %v1257_v22 = vmul.f32 0.03125, %v1252_v56 }
 0x6f6   :  { %v1260_v57 = vsub.f32 %v1249_v50, %v1258_v55 }
 0x6f7   :  { %v1259_v21 = vsub.f32 %v1248_v51, %v1257_v22 }
 0x6f8   :  { %v1262_v58 = vmul.f32 %v1260_v57, %v1260_v57 }
 0x6f9   :  { %v1261_v59 = vmul.f32 %v1259_v21, %v1259_v21 }
 0x6fa   :  { %v1266_v61 = vsel %vm141_vm0, %v1262_v58, 0.0 }
 0x6fb   :  { %1267 = vadd.xlane.f32.xlu1 %v1266_v61  ;;  %v1263_v9 = vsel %vm141_vm0, %v1261_v59, 0.0 }
 0x6fc   :  { %1264 = vadd.xlane.f32.xlu0 %v1263_v9 }
 0x70c   :  { %3643 = vrot.lane.b32.xlu1 %v3642_v4, %s3925_s20 }
 0x712   :  { %3638 = vrot.lane.b32.xlu0 %v3637_v3, %s3925_s20 }
 0x788   :  { %v1268_v8 = vpop.xlane.xlu1 %1267 }
 0x789   :  { %v1270_v12 = vmul.f32 0.03125, %v1268_v8  ;;  %v1265_v16 = vpop.xlane.xlu0 %1264 }
 0x78a   :  { %v1269_v18 = vmul.f32 0.03125, %v1265_v16  ;;  %v1525_v16 = vld [vmem:[#allocation7 + $0x50] sm:$0xff] }
 0x78b   :  { %v1272_v19 = vadd.f32 1e-05, %v1270_v12  ;;  %v1523_v12 = vld [vmem:[#allocation7 + $0x40] sm:$0xff] }
 0x78c   :  { %v1271_v20 = vadd.f32 1e-05, %v1269_v18  ;;  %v3644_v26 = vpop.permute.xlu1 %3643  ;;  %v3481_v18 = vpack.c.bf16 %v1525_v16, %v1523_v12 }
 0x78d   :  { %3744 = vrsqrt.f32 %v1272_v19  ;;  %v3639_v25 = vpop.permute.xlu0 %3638  ;;  %v3646_v29 = vunpack.i.h.bf16 %v3644_v26  ;;  %v3645_v30 = vunpack.i.l.bf16 %v3644_v26  ;;  %v1527_v19 = vld [vmem:[#allocation7 + $0x60] sm:$0xff] }
 0x78e   :  { %3746 = vrsqrt.f32 %v1271_v20  ;;  %v3641_v27 = vunpack.i.h.bf16 %v3639_v25  ;;  %v3640_v28 = vunpack.i.l.bf16 %v3639_v25  ;;  %v1529_v20 = vld [vmem:[#allocation7 + $0x70] sm:$0xff]  ;;  %3482 = vmatprep.subr.bf16.mxu1 %v3481_v18 }
 0x78f   :  { %v3475_v35 = vpack.c.bf16 %v3646_v29, %v3645_v30  ;;  %v3485_v25 = vpack.c.bf16 %v1529_v20, %v1527_v19 }
 0x790   :  { %v3469_v34 = vpack.c.bf16 %v3641_v27, %v3640_v28 }
 0x792   :  { %3471 = vmatprep.subr.msk.bf16.mxu0 %vm4194_vm8, %v3469_v34 }
 0x793   :  { %3474 = vmatpush3.bf16.xpose.msk.msra.mxu0 %vm4194_vm8, %v3469_v34  ;;  %v134_v34 = vld [vmem:[#allocation8 + $0x8] sm:$0xff] }
 0x794   :  { %3477 = vmatprep.subr.msk.bf16.mxu0 %vm4194_vm8, %v3475_v35 }
 0x797   :  { %v3745_v33 = vpop.eup %3744 }
 0x798   :  { %v3747_v36 = vpop.eup %3746  ;;  %v1276_v37 = vmul.f32 %v3745_v33, %v1260_v57  ;;  %v1512_v33 = vsub.s32 7, %v4043_v13 }
 0x799   :  { %v1275_v38 = vmul.f32 %v3747_v36, %v1259_v21 }
 0x79a   :  { %v1282_v40 = vmul.f32 %v1280_v31, %v1276_v37 }
 0x79b   :  { %v1281_v41 = vmul.f32 %v1280_v31, %v1275_v38  ;;  %3480 = vmatpush3.bf16.xpose.msk.msra.mxu0 %vm4194_vm8, %v3475_v35  ;;  %v1513_v35 = vrot.slane %v4048_v15, %v1512_v33  ;;  %v4243_v15 = vld [vmem:[#allocation8 + $0x10] sm:$0xff] }
 0x79c   :  { %v1288_v43 = vadd.f32 %v1286_v39, %v1282_v40 }
 0x79d   :  { %v1287_v42 = vadd.f32 %v1286_v39, %v1281_v41  ;;  %v1519_v39 = vrot.slane %v134_v34, %v4046_v14 }
 0x79f   :  { %3272 = vmatprep.mubr.msk.f32.mxu1 %vm141_vm0, %v1287_v42 }
 0x7a0   :  { %3273 = vmatmul.mubr.msk.f32.vlgmr.msra.gmra.mrb[12].mxu1 %vm141_vm0, %v1288_v43 }
 0x7a1   :  { %3484 = vmatpush3.bf16.msra.mxu1 %v3481_v18 }
 0x7a2   :  { %3486 = vmatprep.subr.bf16.mxu1 %v3485_v25 }
 0x7a5   :  { %3488 = vmatpush3.bf16.msra.mxu1 %v3485_v25 }
 0x873   :  { %v3274_v47 = vpop.f32.mrb[12].mxu1 }
 0x874   :  { %v1371_v48 = vadd.f32 %v3274_v47, %v1292_v46  ;;  %v1365_v49 = vpop.f32.mrb[13].mxu1 }
 0x875   :  { %v1366_v50 = vadd.f32 %v1365_v49, %v1292_v46  ;;  %v1539_v49 = vrot.slane %v4243_v15, %v4046_v14 }
 0x876   :  { %v1375_v52 = vmax.f32 %v1371_v48, 0.0 }
 0x877   :  { %v1374_v51 = vmax.f32 %v1366_v50, 0.0 }
 0x879   :  { %3283 = vmatprep.mubr.msk.f32.mxu0 %vm1392_vm7, %v1374_v51 }
 0x87a   :  { %3284 = vmatmul.mubr.msk.f32.vlgmr.msra.gmra.mrb[10].mxu0 %vm1392_vm7, %v1375_v52 }
 0x94d   :  { %v3285_v55 = vpop.f32.mrb[10].mxu0 }
 0x94e   :  { %v1479_v56 = vadd.f32 %v3285_v55, %v1379_v54  ;;  %v1473_v22 = vpop.f32.mrb[11].mxu0 }
 0x94f   :  { %v1474_v57 = vadd.f32 %v1473_v22, %v1379_v54 }
 0x950   :  { %v1483_v21 = vadd.f32 %v1479_v56, %v1288_v43 }
 0x951   :  { %v1482_v58 = vadd.f32 %v1474_v57, %v1287_v42 }
 0x952   :  { %v1487_v59 = vsel %vm141_vm0, %v1483_v21, 0.0 }
 0x953   :  { %1488 = vadd.xlane.f32.xlu0 %v1487_v59  ;;  %v1484_v61 = vsel %vm141_vm0, %v1482_v58, 0.0 }
 0x954   :  { %1485 = vadd.xlane.f32.xlu1 %v1484_v61 }
 0x9e0   :  { %v1489_v9 = vpop.xlane.xlu0 %1488 }
 0x9e1   :  { %v1491_v5 = vmul.f32 0.03125, %v1489_v9  ;;  %v1486_v62 = vpop.xlane.xlu1 %1485 }
 0x9e2   :  { %v1490_v63 = vmul.f32 0.03125, %v1486_v62 }
 0x9e3   :  { %v1493_v0 = vsub.f32 %v1483_v21, %v1491_v5 }
 0x9e4   :  { %v1492_v1 = vsub.f32 %v1482_v58, %v1490_v63 }
 0x9e5   :  { %v1495_v2 = vmul.f32 %v1493_v0, %v1493_v0 }
 0x9e6   :  { %v1494_v3 = vmul.f32 %v1492_v1, %v1492_v1 }
 0x9e7   :  { %v1499_v4 = vsel %vm141_vm0, %v1495_v2, 0.0 }
 0x9e8   :  { %1500 = vadd.xlane.f32.xlu1 %v1499_v4  ;;  %v1496_v8 = vsel %vm141_vm0, %v1494_v3, 0.0 }
 0x9e9   :  { %1497 = vadd.xlane.f32.xlu0 %v1496_v8 }
 0xa75   :  { %v1501_v26 = vpop.xlane.xlu1 %1500 }
 0xa76   :  { %v1503_v27 = vmul.f32 0.03125, %v1501_v26  ;;  %v1498_v28 = vpop.xlane.xlu0 %1497 }
 0xa77   :  { %v1502_v29 = vmul.f32 0.03125, %v1498_v28 }
 0xa78   :  { %v1505_v30 = vadd.f32 1e-05, %v1503_v27 }
 0xa79   :  { %v1504_v31 = vadd.f32 1e-05, %v1502_v29 }
 0xa7a   :  { %3748 = vrsqrt.f32 %v1505_v30 }
 0xa7b   :  { %3750 = vrsqrt.f32 %v1504_v31 }
 0xa84   :  { %v3749_v36 = vpop.eup %3748 }
 0xa85   :  { %v3751_v37 = vpop.eup %3750  ;;  %v1509_v38 = vmul.f32 %v3749_v36, %v1493_v0 }
 0xa86   :  { %v1508_v40 = vmul.f32 %v3751_v37, %v1492_v1 }
 0xa87   :  { %v1515_v41 = vmul.f32 %v1513_v35, %v1509_v38  ;;  %v1624_v38 = vrot.slane %v4243_v15, %v225_v60 }
 0xa88   :  { %v1514_v42 = vmul.f32 %v1513_v35, %v1508_v40 }
 0xa89   :  { %v4231_v43 = vadd.f32 %v1519_v39, %v1515_v41 }
 0xa8a   :  { %v4233_v46 = vadd.f32 %v1519_v39, %v1514_v42 }
 0xa8b   :  { %v1535_v48 = vadd.f32 %v4231_v43, %v4035_v10  ;;  %v4256_v10 = vpack.i.bf16 %v1529_v20, %v1527_v19 }
 0xa8c   :  { %v1534_v47 = vadd.f32 %v4233_v46, %v4028_v6  ;;  %v4253_v6 = vpack.i.bf16 %v1525_v16, %v1523_v12 }
 0xa8e   :  { %3294 = vmatprep.mubr.msk.f32.mxu1 %vm141_vm0, %v1534_v47 }
 0xa8f   :  { %3295 = vmatmul.mubr.msk.f32.vlgmr.msra.gmra.mrb[14].mxu1 %vm141_vm0, %v1535_v48 }
 0xa90   :  { %3305 = vmatprep.mubr.msk.f32.mxu1 %vm141_vm0, %v4233_v46 }
 0xb62   :  { %v3296_v50 = vpop.f32.mrb[14].mxu1 }
 0xb63   :  { %v1618_v51 = vadd.f32 %v3296_v50, %v1539_v49  ;;  %v1612_v52 = vpop.f32.mrb[15].mxu1 }
 0xb64   :  { %v1613_v54 = vadd.f32 %v1612_v52, %v1539_v49 }
 0xb65   :  { %1726 = vrot.lane.b32.xlu1 %v1618_v51, %s3923_s18 }
 0xb66   :  { %1724 = vrot.lane.b32.xlu0 %v1613_v54, %s3923_s18  ;;  %3312 = vmatprep.mubr.msk.f32.mxu0 %vm362_vm1, %v1613_v54  ;;  %v3657_v55 = vpack.i.bf16 %v1618_v51, %v1613_v54 }
 0xb69   :  { %1728 = vrot.lane.b32.xlu1 %v1613_v54, %s3922_s3 }
 0xb6a   :  { %1730 = vrot.lane.b32.xlu0 %v1618_v51, %s3922_s3 }
 0xb6d   :  { %1732 = vrot.lane.b32.xlu1 %v1613_v54, %s3924_s19 }
 0xb6e   :  { %1734 = vrot.lane.b32.xlu0 %v1618_v51, %s3924_s19 }
 0xb71   :  { %3648 = vrot.lane.b32.xlu1 %v4253_v6, %s3925_s20 }
 0xb72   :  { %3653 = vrot.lane.b32.xlu0 %v4256_v10, %s3925_s20 }
 0xb75   :  { %3658 = vrot.lane.b32.xlu1 %v3657_v55, %s3926_s22 }
 0xbd7   :  { %v1727_v56 = vpop.permute.xlu1 %1726 }
 0xbd8   :  { %v1725_v22 = vpop.permute.xlu0 %1724 }
 0xbd9   :  { %v3662_v57 = vpack.i.bf16 %v1727_v56, %v1725_v22 }
 0xbdb   :  { %v1729_v21 = vpop.permute.xlu1 %1728  ;;  %3663 = vrot.lane.b32.xlu0 %v3662_v57, %s3926_s22 }
 0xbdc   :  { %v1731_v58 = vpop.permute.xlu0 %1730 }
 0xbdd   :  { %v3667_v59 = vpack.i.bf16 %v1731_v58, %v1729_v21 }
 0xbdf   :  { %v1733_v61 = vpop.permute.xlu1 %1732  ;;  %3668 = vrot.lane.b32.xlu1 %v3667_v59, %s3926_s22 }
 0xbe0   :  { %v1735_v9 = vpop.permute.xlu0 %1734 }
 0xbe1   :  { %v3672_v5 = vpack.i.bf16 %v1735_v9, %v1733_v61 }
 0xbe3   :  { %v3649_v62 = vpop.permute.xlu1 %3648  ;;  %3673 = vrot.lane.b32.xlu0 %v3672_v5, %s3926_s22 }
 0xbe4   :  { %v3651_v63 = vunpack.i.h.bf16 %v3649_v62  ;;  %v3650_v0 = vunpack.i.l.bf16 %v3649_v62  ;;  %v3654_v1 = vpop.permute.xlu0 %3653 }
 0xbe5   :  { %v3656_v2 = vunpack.i.h.bf16 %v3654_v1  ;;  %v3655_v3 = vunpack.i.l.bf16 %v3654_v1 }
 0xbe6   :  { %v3489_v4 = vpack.c.bf16 %v3651_v63, %v3650_v0 }
 0xbe7   :  { %v3659_v8 = vpop.permute.xlu1 %3658  ;;  %v3493_v12 = vpack.c.bf16 %v3656_v2, %v3655_v3 }
 0xbe8   :  { %v3661_v16 = vunpack.i.h.bf16 %v3659_v8  ;;  %v3660_v18 = vunpack.i.l.bf16 %v3659_v8  ;;  %3490 = vmatprep.subr.bf16.mxu1 %v3489_v4 }
 0xbe9   :  { %3492 = vmatpush3.bf16.msra.mxu1 %v3489_v4 }
 0xbea   :  { %v3497_v19 = vpack.c.bf16 %v3661_v16, %v3660_v18  ;;  %3494 = vmatprep.subr.bf16.mxu1 %v3493_v12 }
 0xbec   :  { %3499 = vmatprep.subr.msk.bf16.mxu0 %vm4073_vm2, %v3497_v19 }
 0xbed   :  { %3496 = vmatpush3.bf16.msra.mxu1 %v3493_v12  ;;  %3502 = vmatpush3.bf16.xpose.msk.msra.mxu0 %vm4073_vm2, %v3497_v19 }
 0xbf0   :  { %3306 = vmatmul.mubr.msk.f32.vlgmr.msra.gmra.mrb[16].mxu1 %vm141_vm0, %v4231_v43 }
 0xbf1   :  { %3319 = vmatprep.mubr.msk.f32.mxu1 %vm362_vm1, %v1725_v22 }
 0xbf4   :  { %3313 = vmatmul.mubr.msk.f32.vlgmr.msra.gmra.mrb[12].mxu0 %vm362_vm1, %v1618_v51 }
 0xbf5   :  { %3326 = vmatprep.mubr.msk.f32.mxu0 %vm362_vm1, %v1729_v21 }
 0xc4d   :  { %v3664_v20 = vpop.permute.xlu0 %3663 }
 0xc4e   :  { %v3666_v25 = vunpack.i.h.bf16 %v3664_v20  ;;  %v3665_v26 = vunpack.i.l.bf16 %v3664_v20 }
 0xc50   :  { %v3503_v27 = vpack.c.bf16 %v3666_v25, %v3665_v26 }
 0xc51   :  { %v3669_v28 = vpop.permute.xlu1 %3668 }
 0xc52   :  { %v3671_v29 = vunpack.i.h.bf16 %v3669_v28  ;;  %v3670_v30 = vunpack.i.l.bf16 %v3669_v28  ;;  %3505 = vmatprep.subr.msk.bf16.mxu1 %vm4073_vm2, %v3503_v27 }
 0xc53   :  { %3508 = vmatpush3.bf16.xpose.msk.msra.mxu1 %vm4073_vm2, %v3503_v27 }
 0xc54   :  { %v3509_v31 = vpack.c.bf16 %v3671_v29, %v3670_v30 }
 0xc55   :  { %v3674_v34 = vpop.permute.xlu0 %3673 }
 0xc56   :  { %v3676_v35 = vunpack.i.h.bf16 %v3674_v34  ;;  %v3675_v36 = vunpack.i.l.bf16 %v3674_v34  ;;  %3511 = vmatprep.subr.msk.bf16.mxu0 %vm4073_vm2, %v3509_v31 }
 0xc57   :  { %3514 = vmatpush3.bf16.xpose.msk.msra.mxu0 %vm4073_vm2, %v3509_v31 }
 0xc58   :  { %v3515_v37 = vpack.c.bf16 %v3676_v35, %v3675_v36 }
 0xc5a   :  { %3320 = vmatmul.mubr.msk.f32.vlgmr.msra.gmra.mrb[18].mxu1 %vm362_vm1, %v1727_v56  ;;  %3517 = vmatprep.subr.msk.bf16.mxu1 %vm4073_vm2, %v3515_v37 }
 0xc5b   :  { %3520 = vmatpush3.bf16.xpose.msk.msra.mxu1 %vm4073_vm2, %v3515_v37  ;;  %3333 = vmatprep.mubr.msk.f32.mxu1 %vm362_vm1, %v1733_v61 }
 0xc5e   :  { %3327 = vmatmul.mubr.msk.f32.vlgmr.msra.gmra.mrb[14].mxu0 %vm362_vm1, %v1731_v58 }
 0xc62   :  { %3334 = vmatmul.mubr.msk.f32.vlgmr.msra.gmra.mrb[20].mxu1 %vm362_vm1, %v1735_v9 }
 0xcc3   :  { %v3307_v39 = vpop.f32.mrb[16].mxu1 }
 0xcc4   :  { %v1719_v40 = vadd.f32 %v3307_v39, %v1624_v38  ;;  %v1713_v41 = vpop.f32.mrb[17].mxu1 }
 0xcc5   :  { %v1714_v42 = vadd.f32 %v1713_v41, %v1624_v38 }
 0xcc7   :  { %v3314_v47 = vpop.f32.mrb[12].mxu0  ;;  %v3521_v48 = vpack.c.bf16 %v1719_v40, %v1714_v42  ;;  %v4294_v49 = vpack.i.bf16 %v1719_v40, %v1714_v42 }
 0xcc8   :  { %v1840_v44 = vadd.f32 %v3314_v47, %v4109_v7  ;;  %v1834_v50 = vpop.f32.mrb[13].mxu0 }
 0xcc9   :  { %v1835_v51 = vadd.f32 %v1834_v50, %v4111_v11  ;;  %3522 = vmatprep.subr.bf16.mxu0 %v3521_v48 }
 0xcca   :  { %3524 = vmatpush3.bf16.msra.mxu0 %v3521_v48  ;;  %v2107_v52 = vsel %vm707_vm5, %v1840_v44, -inf }
 0xccb   :  { %2108 = vmax.xlane.f32.xlu0 %v2107_v52  ;;  %v2104_v60 = vsel %vm707_vm5, %v1835_v51, -inf }
 0xccc   :  { %2105 = vmax.xlane.f32.xlu1 %v2104_v60 }
 0xd2d   :  { %v3321_v54 = vpop.f32.mrb[18].mxu1 }
 0xd2e   :  { %v1927_v55 = vadd.f32 %v3321_v54, %v4109_v7  ;;  %v1921_v56 = vpop.f32.mrb[19].mxu1 }
 0xd2f   :  { %v1922_v22 = vadd.f32 %v1921_v56, %v4111_v11 }
 0xd30   :  { %v2113_v57 = vsel %vm707_vm5, %v1927_v55, -inf }
 0xd31   :  { %v3328_v21 = vpop.f32.mrb[14].mxu0  ;;  %2114 = vmax.xlane.f32.xlu1 %v2113_v57  ;;  %v2110_v58 = vsel %vm707_vm5, %v1922_v22, -inf }
 0xd32   :  { %v2014_v59 = vadd.f32 %v3328_v21, %v4109_v7  ;;  %2111 = vmax.xlane.f32.xlu0 %v2110_v58  ;;  %v2008_v61 = vpop.f32.mrb[15].mxu0 }
 0xd33   :  { %v2009_v9 = vadd.f32 %v2008_v61, %v4111_v11 }
 0xd34   :  { %v2119_v5 = vsel %vm707_vm5, %v2014_v59, -inf }
 0xd35   :  { %v3335_v62 = vpop.f32.mrb[20].mxu1  ;;  %2120 = vmax.xlane.f32.xlu1 %v2119_v5  ;;  %v2116_v63 = vsel %vm707_vm5, %v2009_v9, -inf }
 0xd36   :  { %v2101_v0 = vadd.f32 %v3335_v62, %v4109_v7  ;;  %v2095_v1 = vpop.f32.mrb[21].mxu1  ;;  %2117 = vmax.xlane.f32.xlu0 %v2116_v63 }
 0xd37   :  { %v2096_v2 = vadd.f32 %v2095_v1, %v4111_v11 }
 0xd38   :  { %v2125_v3 = vsel %vm707_vm5, %v2101_v0, -inf }
 0xd39   :  { %2126 = vmax.xlane.f32.xlu1 %v2125_v3  ;;  %v2122_v4 = vsel %vm707_vm5, %v2096_v2, -inf }
 0xd3a   :  { %2123 = vmax.xlane.f32.xlu0 %v2122_v4 }
 0xd58   :  { %v2109_v8 = vpop.xlane.xlu0 %2108 }
 0xd59   :  { %v2129_v12 = vsub.f32 %v1840_v44, %v2109_v8  ;;  %v2106_v16 = vpop.xlane.xlu1 %2105 }
 0xd5a   :  { %v2128_v18 = vsub.f32 %v1835_v51, %v2106_v16 }
 0xd5b   :  { %v2138_v19 = vmul.f32 1.442695, %v2129_v12 }
 0xd5c   :  { %v2136_v20 = vmul.f32 1.442695, %v2128_v18 }
 0xd5d   :  { %3752 = vpow2.f32 %v2138_v19 }
 0xd5e   :  { %3754 = vpow2.f32 %v2136_v20 }
 0xd67   :  { %v3753_v25 = vpop.eup %3752 }
 0xd68   :  { %v3755_v7 = vpop.eup %3754  ;;  %v2155_v26 = vsel %vm707_vm5, %v3753_v25, 0.0 }
 0xd69   :  { %2156 = vadd.xlane.f32.xlu1 %v2155_v26  ;;  %v2152_v11 = vsel %vm707_vm5, %v3755_v7, 0.0 }
 0xd6a   :  { %2153 = vadd.xlane.f32.xlu0 %v2152_v11 }
 0xdbe   :  { %v2115_v27 = vpop.xlane.xlu1 %2114 }
 0xdbf   :  { %v2131_v28 = vsub.f32 %v1927_v55, %v2115_v27  ;;  %v2112_v29 = vpop.xlane.xlu0 %2111 }
 0xdc0   :  { %v2130_v30 = vsub.f32 %v1922_v22, %v2112_v29 }
 0xdc1   :  { %v2142_v31 = vmul.f32 1.442695, %v2131_v28 }
 0xdc2   :  { %v2140_v34 = vmul.f32 1.442695, %v2130_v30  ;;  %v2121_v35 = vpop.xlane.xlu1 %2120 }
 0xdc3   :  { %3756 = vpow2.f32 %v2142_v31  ;;  %v2133_v36 = vsub.f32 %v2014_v59, %v2121_v35  ;;  %v2118_v37 = vpop.xlane.xlu0 %2117 }
 0xdc4   :  { %3758 = vpow2.f32 %v2140_v34  ;;  %v2132_v38 = vsub.f32 %v2009_v9, %v2118_v37 }
 0xdc5   :  { %v2146_v39 = vmul.f32 1.442695, %v2133_v36 }
 0xdc6   :  { %v2144_v40 = vmul.f32 1.442695, %v2132_v38  ;;  %v2127_v41 = vpop.xlane.xlu1 %2126 }
 0xdc7   :  { %3760 = vpow2.f32 %v2146_v39  ;;  %v2135_v42 = vsub.f32 %v2101_v0, %v2127_v41  ;;  %v2124_v47 = vpop.xlane.xlu0 %2123 }
 0xdc8   :  { %3762 = vpow2.f32 %v2144_v40  ;;  %v2134_v48 = vsub.f32 %v2096_v2, %v2124_v47 }
 0xdc9   :  { %v2150_v44 = vmul.f32 1.442695, %v2135_v42 }
 0xdca   :  { %v2148_v50 = vmul.f32 1.442695, %v2134_v48 }
 0xdcb   :  { %3764 = vpow2.f32 %v2150_v44 }
 0xdcc   :  { %3766 = vpow2.f32 %v2148_v50 }
 0xdcd   :  { %v4314_v51 = vpop.eup %3756 }
 0xdce   :  { %v3759_v52 = vpop.eup %3758  ;;  %v2161_v60 = vsel %vm707_vm5, %v4314_v51, 0.0 }
 0xdcf   :  { %2162 = vadd.xlane.f32.xlu1 %v2161_v60  ;;  %v2158_v54 = vsel %vm707_vm5, %v3759_v52, 0.0 }
 0xdd0   :  { %2159 = vadd.xlane.f32.xlu0 %v2158_v54 }
 0xdd1   :  { %v3761_v55 = vpop.eup %3760 }
 0xdd2   :  { %v3763_v56 = vpop.eup %3762  ;;  %v2167_v22 = vsel %vm707_vm5, %v3761_v55, 0.0 }
 0xdd3   :  { %2168 = vadd.xlane.f32.xlu1 %v2167_v22  ;;  %v2164_v57 = vsel %vm707_vm5, %v3763_v56, 0.0 }
 0xdd4   :  { %2165 = vadd.xlane.f32.xlu0 %v2164_v57 }
 0xdd5   :  { %v4321_v21 = vpop.eup %3764 }
 0xdd6   :  { %v3767_v58 = vpop.eup %3766  ;;  %v2173_v59 = vsel %vm707_vm5, %v4321_v21, 0.0 }
 0xdd7   :  { %2174 = vadd.xlane.f32.xlu1 %v2173_v59  ;;  %v2170_v61 = vsel %vm707_vm5, %v3767_v58, 0.0 }
 0xdd8   :  { %2171 = vadd.xlane.f32.xlu0 %v2170_v61 }
 0xde8   :  { %3683 = vrot.lane.b32.xlu1 %v4294_v49, %s3922_s3 }
 0xdec   :  { %3688 = vrot.lane.b32.xlu1 %v4294_v49, %s3924_s19 }
 0xdee   :  { %3678 = vrot.lane.b32.xlu0 %v4294_v49, %s3923_s18 }
 0xdf0   :  { %3698 = vrot.lane.b32.xlu1 %v4256_v10, %s3928_s23 }
 0xdf2   :  { %3693 = vrot.lane.b32.xlu0 %v4253_v6, %s3928_s23 }
 0xdf6   :  { %v2157_v9 = vpop.xlane.xlu1 %2156 }
 0xdf7   :  { %3768 = vrcp.f32 %v2157_v9  ;;  %v2154_v5 = vpop.xlane.xlu0 %2153 }
 0xdf8   :  { %3770 = vrcp.f32 %v2154_v5 }
 0xe01   :  { %v3769_v62 = vpop.eup %3768 }
 0xe02   :  { %v3771_v63 = vpop.eup %3770  ;;  %v2185_v1 = vmul.f32 %v3769_v62, %v3753_v25 }
 0xe03   :  { %v2184_v0 = vmul.f32 %v3771_v63, %v3755_v7 }
 0xe05   :  { %3340 = vmatprep.mubr.msk.f32.mxu0 %vm707_vm5, %v2184_v0 }
 0xe06   :  { %3341 = vmatmul.mubr.msk.f32.vlgmr.msra.gmra.mrb[16].mxu0 %vm707_vm5, %v2185_v1 }
 0xe5c   :  { %v2163_v2 = vpop.xlane.xlu1 %2162 }
 0xe5d   :  { %v2160_v49 = vpop.xlane.xlu0 %2159 }
 0xe5e   :  { %3772 = vrcp.f32 %v2160_v49 }
 0xe60   :  { %v2169_v3 = vpop.xlane.xlu1 %2168 }
 0xe61   :  { %3774 = vrcp.f32 %v2169_v3  ;;  %v2166_v4 = vpop.xlane.xlu0 %2165 }
 0xe62   :  { %3776 = vrcp.f32 %v2166_v4 }
 0xe63   :  { %3778 = vrcp.f32 %v2163_v2 }
 0xe64   :  { %v2175_v8 = vpop.xlane.xlu1 %2174 }
 0xe65   :  { %v2172_v12 = vpop.xlane.xlu0 %2171 }
 0xe66   :  { %3780 = vrcp.f32 %v2172_v12 }
 0xe67   :  { %3782 = vrcp.f32 %v2175_v8 }
 0xe68   :  { %v3773_v16 = vpop.eup %3772  ;;  %v3684_v18 = vpop.permute.xlu1 %3683 }
 0xe69   :  { %v3686_v19 = vunpack.i.h.bf16 %v3684_v18  ;;  %v3685_v20 = vunpack.i.l.bf16 %v3684_v18  ;;  %v3679_v25 = vpop.permute.xlu0 %3678  ;;  %v2186_v6 = vmul.f32 %v3773_v16, %v3759_v52  ;;  %v2549_v16 = vrot.slane %v4243_v15, %v1153_v45 }
 0xe6a   :  { %v3681_v7 = vunpack.i.h.bf16 %v3679_v25  ;;  %v3680_v26 = vunpack.i.l.bf16 %v3679_v25 }
 0xe6b   :  { %v3775_v10 = vpop.eup %3774  ;;  %v3529_v11 = vpack.c.bf16 %v3686_v19, %v3685_v20  ;;  %3347 = vmatprep.mubr.msk.f32.mxu1 %vm707_vm5, %v2186_v6 }
 0xe6c   :  { %v3777_v27 = vpop.eup %3776  ;;  %v3525_v28 = vpack.c.bf16 %v3681_v7, %v3680_v26  ;;  %v3689_v29 = vpop.permute.xlu1 %3688  ;;  %v2189_v36 = vmul.f32 %v3775_v10, %v3761_v55 }
 0xe6d   :  { %v3779_v30 = vpop.eup %3778  ;;  %v3691_v31 = vunpack.i.h.bf16 %v3689_v29  ;;  %v3690_v34 = vunpack.i.l.bf16 %v3689_v29  ;;  %3530 = vmatprep.subr.bf16.mxu0 %v3529_v11  ;;  %v2188_v35 = vmul.f32 %v3777_v27, %v3763_v56  ;;  %v3694_v47 = vpop.permute.xlu0 %3693 }
 0xe6e   :  { %3526 = vmatprep.subr.bf16.mxu1 %v3525_v28  ;;  %3532 = vmatpush3.bf16.msra.mxu0 %v3529_v11  ;;  %v2187_v39 = vmul.f32 %v3779_v30, %v4314_v51  ;;  %v3696_v44 = vunpack.i.h.bf16 %v3694_v47  ;;  %v3695_v50 = vunpack.i.l.bf16 %v3694_v47 }
 0xe6f   :  { %v3533_v37 = vpack.c.bf16 %v3691_v31, %v3690_v34  ;;  %3528 = vmatpush3.bf16.msra.mxu1 %v3525_v28  ;;  %3354 = vmatprep.mubr.msk.f32.mxu0 %vm707_vm5, %v2188_v35 }
 0xe70   :  { %v3781_v38 = vpop.eup %3780  ;;  %v3699_v48 = vpop.permute.xlu1 %3698  ;;  %v3537_v60 = vpack.c.bf16 %v3696_v44, %v3695_v50 }
 0xe71   :  { %v3783_v40 = vpop.eup %3782  ;;  %3355 = vmatmul.mubr.msk.f32.vlgmr.msra.gmra.mrb[18].mxu0 %vm707_vm5, %v2189_v36  ;;  %3534 = vmatprep.subr.bf16.mxu1 %v3533_v37  ;;  %v2190_v41 = vmul.f32 %v3781_v38, %v3767_v58  ;;  %v3701_v52 = vunpack.i.h.bf16 %v3699_v48  ;;  %v3700_v51 = vunpack.i.l.bf16 %v3699_v48  ;;  %v1526_v36 = vld [vmem:[#allocation7 + $0x58] sm:$0xff]  ;;  %v1528_v38 = vld [vmem:[#allocation7 + $0x68] sm:$0xff] }
 0xe72   :  { %3348 = vmatmul.mubr.msk.f32.vlgmr.msra.gmra.mrb[22].mxu1 %vm707_vm5, %v2187_v39  ;;  %v2191_v42 = vmul.f32 %v3783_v40, %v4321_v21  ;;  %3538 = vmatprep.subr.bf16.mxu0 %v3537_v60  ;;  %v1530_v39 = vld [vmem:[#allocation7 + $0x78] sm:$0xff] }
 0xe73   :  { %3536 = vmatpush3.bf16.msra.mxu1 %v3533_v37  ;;  %3361 = vmatprep.mubr.msk.f32.mxu1 %vm707_vm5, %v2190_v41  ;;  %v3541_v54 = vpack.c.bf16 %v3701_v52, %v3700_v51  ;;  %v3549_v40 = vpack.c.bf16 %v1530_v39, %v1528_v38 }
 0xe74   :  { %3540 = vmatpush3.bf16.msra.mxu0 %v3537_v60  ;;  %v2674_v60 = vrot.slane %v4243_v15, %v1279_v23 }
 0xe75   :  { %3542 = vmatprep.subr.bf16.mxu0 %v3541_v54 }
 0xe76   :  { %3362 = vmatmul.mubr.msk.f32.vlgmr.msra.gmra.mrb[24].mxu1 %vm707_vm5, %v2191_v42  ;;  %v3707_v42 = vpack.i.bf16 %v1530_v39, %v1528_v38 }
 0xe78   :  { %3544 = vmatpush3.bf16.msra.mxu0 %v3541_v54 }
 0xed9   :  { %v3342_v55 = vpop.f32.mrb[16].mxu0 }
 0xeda   :  { %v2264_v56 = vpop.f32.mrb[17].mxu0 }
 0xf44   :  { %v3356_v22 = vpop.f32.mrb[18].mxu0 }
 0xf45   :  { %v3349_v57 = vpop.f32.mrb[22].mxu1  ;;  %v2426_v58 = vpop.f32.mrb[19].mxu0 }
 0xf46   :  { %2520 = vrot.lane.b32.xlu1 %v3349_v57, %s3917_s6  ;;  %v2345_v21 = vpop.f32.mrb[23].mxu1 }
 0xf47   :  { %2518 = vrot.lane.b32.xlu0 %v2345_v21, %s3917_s6 }
 0xf49   :  { %v3363_v59 = vpop.f32.mrb[24].mxu1 }
 0xf4a   :  { %v2507_v61 = vpop.f32.mrb[25].mxu1  ;;  %2528 = vrot.lane.b32.xlu1 %v3356_v22, %s3920_s21 }
 0xf4b   :  { %2526 = vrot.lane.b32.xlu0 %v2426_v58, %s3920_s21 }
 0xf4e   :  { %2536 = vrot.lane.b32.xlu1 %v3363_v59, %s3929_s24 }
 0xf4f   :  { %2534 = vrot.lane.b32.xlu0 %v2507_v61, %s3929_s24  ;;  %v2680_v61 = vrot.slane %v4243_v15, %v1285_v24  ;;  %v2686_v24 = vrot.slane %v4243_v15, %v4212_v17 }
 0xfb8   :  { %v2521_v9 = vpop.permute.xlu1 %2520 }
 0xfb9   :  { %v2519_v5 = vpop.permute.xlu0 %2518  ;;  %v2541_v2 = vsel %vm362_vm1, %v3342_v55, %v2521_v9 }
 0xfba   :  { %v2540_v0 = vsel %vm362_vm1, %v2264_v56, %v2519_v5 }
 0xfbc   :  { %v2529_v62 = vpop.permute.xlu1 %2528 }
 0xfbd   :  { %v2527_v63 = vpop.permute.xlu0 %2526  ;;  %v2543_v4 = vsel %vm707_vm5, %v2541_v2, %v2529_v62 }
 0xfbe   :  { %v2542_v49 = vsel %vm707_vm5, %v2540_v0, %v2527_v63 }
 0xfc0   :  { %v2537_v1 = vpop.permute.xlu1 %2536 }
 0xfc1   :  { %v2535_v3 = vpop.permute.xlu0 %2534  ;;  %v2545_v12 = vsel %vm1148_vm6, %v2543_v4, %v2537_v1 }
 0xfc2   :  { %v2544_v8 = vsel %vm1148_vm6, %v2542_v49, %v2535_v3 }
 0xfc3   :  { %3372 = vmatprep.mubr.msk.f32.mxu0 %vm141_vm0, %v2544_v8 }
 0xfc4   :  { %3373 = vmatmul.mubr.msk.f32.vlgmr.msra.gmra.mrb[20].mxu0 %vm141_vm0, %v2545_v12 }
0x1097   :  { %v3374_v18 = vpop.f32.mrb[20].mxu0 }
0x1098   :  { %v2640_v19 = vadd.f32 %v3374_v18, %v2549_v16  ;;  %v2634_v20 = vpop.f32.mrb[21].mxu0  ;;  %v2773_v18 = vrot.slane %v4243_v15, %v1378_v53 }
0x1099   :  { %v2635_v25 = vadd.f32 %v2634_v20, %v2549_v16 }
0x109a   :  { %v2644_v6 = vadd.f32 %v2640_v19, %v4231_v43 }
0x109b   :  { %v2643_v7 = vadd.f32 %v2635_v25, %v4233_v46  ;;  %v1524_v46 = vld [vmem:[#allocation7 + $0x48] sm:$0xff] }
0x109c   :  { %v2648_v26 = vsel %vm141_vm0, %v2644_v6, 0.0  ;;  %v3545_v37 = vpack.c.bf16 %v1526_v36, %v1524_v46  ;;  %v3702_v41 = vpack.i.bf16 %v1526_v36, %v1524_v46 }
0x109d   :  { %2649 = vadd.xlane.f32.xlu1 %v2648_v26  ;;  %v2645_v10 = vsel %vm141_vm0, %v2643_v7, 0.0 }
0x109e   :  { %2646 = vadd.xlane.f32.xlu0 %v2645_v10  ;;  %3546 = vmatprep.subr.bf16.mxu1 %v3545_v37 }
0x109f   :  { %3548 = vmatpush3.bf16.msra.mxu1 %v3545_v37 }
0x10a0   :  { %3550 = vmatprep.subr.bf16.mxu1 %v3549_v40 }
0x10a3   :  { %3552 = vmatpush3.bf16.msra.mxu1 %v3549_v40  ;;  %v1533_v40 = vld [vmem:[#allocation8 + $0x18] sm:$0xff] }
0x10ae   :  { %3703 = vrot.lane.b32.xlu1 %v3702_v41, %s3925_s20  ;;  %v2906_v41 = vrot.slane %v4243_v15, %v1512_v33 }
0x112a   :  { %v2650_v11 = vpop.xlane.xlu1 %2649 }
0x112b   :  { %v2652_v27 = vmul.f32 0.03125, %v2650_v11  ;;  %v2647_v28 = vpop.xlane.xlu0 %2646 }
0x112c   :  { %v2651_v29 = vmul.f32 0.03125, %v2647_v28 }
0x112d   :  { %v2654_v30 = vsub.f32 %v2644_v6, %v2652_v27 }
0x112e   :  { %v2653_v45 = vsub.f32 %v2643_v7, %v2651_v29  ;;  %v3704_v54 = vpop.permute.xlu1 %3703 }
0x112f   :  { %v2656_v35 = vmul.f32 %v2654_v30, %v2654_v30  ;;  %v3706_v22 = vunpack.i.h.bf16 %v3704_v54  ;;  %v3705_v57 = vunpack.i.l.bf16 %v3704_v54 }
0x1130   :  { %v2655_v31 = vmul.f32 %v2653_v45, %v2653_v45 }
0x1131   :  { %v2660_v43 = vsel %vm141_vm0, %v2656_v35, 0.0  ;;  %v3553_v9 = vpack.c.bf16 %v3706_v22, %v3705_v57 }
0x1132   :  { %v2657_v34 = vsel %vm141_vm0, %v2655_v31, 0.0 }
0x1133   :  { %2658 = vadd.xlane.f32.xlu0 %v2657_v34  ;;  %3555 = vmatprep.subr.msk.bf16.mxu0 %vm4194_vm8, %v3553_v9 }
0x1134   :  { %3558 = vmatpush3.bf16.xpose.msk.msra.mxu0 %vm4194_vm8, %v3553_v9 }
0x1137   :  { %2661 = vadd.xlane.f32.xlu0 %v2660_v43 }
0x114d   :  { %3708 = vrot.lane.b32.xlu0 %v3707_v42, %s3925_s20 }
0x11c0   :  { %v2659_v47 = vpop.xlane.xlu0 %2658 }
0x11c1   :  { %v2663_v48 = vmul.f32 0.03125, %v2659_v47 }
0x11c3   :  { %v2665_v44 = vadd.f32 1e-05, %v2663_v48 }
0x11c4   :  { %v2662_v50 = vpop.xlane.xlu0 %2661 }
0x11c5   :  { %3784 = vrsqrt.f32 %v2665_v44  ;;  %v2664_v52 = vmul.f32 0.03125, %v2662_v50  ;;  %v2912_v44 = vrot.slane %v1533_v40, %v4046_v14 }
0x11c7   :  { %v2666_v51 = vadd.f32 1e-05, %v2664_v52 }
0x11c8   :  { %v3709_v55 = vpop.permute.xlu0 %3708 }
0x11c9   :  { %3786 = vrsqrt.f32 %v2666_v51  ;;  %v3711_v58 = vunpack.i.h.bf16 %v3709_v55  ;;  %v3710_v21 = vunpack.i.l.bf16 %v3709_v55 }
0x11cb   :  { %v3559_v5 = vpack.c.bf16 %v3711_v58, %v3710_v21 }
0x11cd   :  { %3561 = vmatprep.subr.msk.bf16.mxu0 %vm4194_vm8, %v3559_v5 }
0x11ce   :  { %3564 = vmatpush3.bf16.xpose.msk.msra.mxu0 %vm4194_vm8, %v3559_v5 }
0x11cf   :  { %v3785_v56 = vpop.eup %3784 }
0x11d0   :  { %v2669_v59 = vmul.f32 %v3785_v56, %v2653_v45 }
0x11d2   :  { %v2675_v62 = vmul.f32 %v2674_v60, %v2669_v59 }
0x11d3   :  { %v3787_v63 = vpop.eup %3786 }
0x11d4   :  { %v2670_v23 = vmul.f32 %v3787_v63, %v2654_v30  ;;  %v2681_v0 = vadd.f32 %v2680_v61, %v2675_v62 }
0x11d6   :  { %v2676_v1 = vmul.f32 %v2674_v60, %v2670_v23  ;;  %3383 = vmatprep.mubr.msk.f32.mxu1 %vm141_vm0, %v2681_v0 }
0x11d8   :  { %v2682_v2 = vadd.f32 %v2680_v61, %v2676_v1 }
0x11da   :  { %3384 = vmatmul.mubr.msk.f32.vlgmr.msra.gmra.mrb[26].mxu1 %vm141_vm0, %v2682_v2 }
0x12ad   :  { %v3385_v49 = vpop.f32.mrb[26].mxu1 }
0x12ae   :  { %v2765_v3 = vadd.f32 %v3385_v49, %v2686_v24  ;;  %v2759_v4 = vpop.f32.mrb[27].mxu1 }
0x12af   :  { %v2760_v8 = vadd.f32 %v2759_v4, %v2686_v24 }
0x12b0   :  { %v2769_v16 = vmax.f32 %v2765_v3, 0.0 }
0x12b1   :  { %v2768_v12 = vmax.f32 %v2760_v8, 0.0 }
0x12b3   :  { %3394 = vmatprep.mubr.msk.f32.mxu0 %vm1392_vm7, %v2768_v12 }
0x12b4   :  { %3395 = vmatmul.mubr.msk.f32.vlgmr.msra.gmra.mrb[22].mxu0 %vm1392_vm7, %v2769_v16 }
0x1387   :  { %v3396_v19 = vpop.f32.mrb[22].mxu0 }
0x1388   :  { %v2872_v32 = vadd.f32 %v3396_v19, %v2773_v18  ;;  %v2866_v20 = vpop.f32.mrb[23].mxu0 }
0x1389   :  { %v2867_v25 = vadd.f32 %v2866_v20, %v2773_v18 }
0x138a   :  { %v2876_v6 = vadd.f32 %v2872_v32, %v2682_v2  ;;  %v2915_v2 = vld [vmem:[%s4432_s4] sm:$0x3]  ;;  %s3884_s4 = scalar_lea.vmem %s2962_s28, 256 }
0x138b   :  { %v2875_v7 = vadd.f32 %v2867_v25, %v2681_v0  ;;  %v2945_v24 = vrot.slane %v2915_v2, %v4046_v14  ;;  %v2951_v8 = vrot.slane %v2915_v2, %v4212_v17  ;;  %p3885_p4 = scmp.ne.s32.totalorder %s2962_s28, %s3884_s4  ;;  %p3890_p6 = scmp.lt.s32.totalorder %s3884_s4, %s3884_s4 }
0x138c   :  { %v2880_v26 = vsel %vm141_vm0, %v2876_v6, 0.0 }
0x138d   :  { %2881 = vadd.xlane.f32.xlu0 %v2880_v26  ;;  %v2877_v10 = vsel %vm141_vm0, %v2875_v7, 0.0  ;;  %p3891_p7 = por %p3890_p6, %p3889_p5 }
0x138e   :  { %2878 = vadd.xlane.f32.xlu1 %v2877_v10 }
0x138f   :  { %p3892_p8 = pnand %p3891_p7, %p3885_p4 }
0x141a   :  { %v2882_v11 = vpop.xlane.xlu0 %2881 }
0x141b   :  { %v2884_v27 = vmul.f32 0.03125, %v2882_v11  ;;  %v2879_v28 = vpop.xlane.xlu1 %2878 }
0x141c   :  { %v2883_v29 = vmul.f32 0.03125, %v2879_v28 }
0x141d   :  { %v2886_v30 = vsub.f32 %v2876_v6, %v2884_v27 }
0x141e   :  { %v2885_v45 = vsub.f32 %v2875_v7, %v2883_v29 }
0x141f   :  { %v2888_v31 = vmul.f32 %v2886_v30, %v2886_v30 }
0x1420   :  { %v2887_v53 = vmul.f32 %v2885_v45, %v2885_v45 }
0x1421   :  { %v2892_v34 = vsel %vm141_vm0, %v2888_v31, 0.0 }
0x1422   :  { %2893 = vadd.xlane.f32.xlu0 %v2892_v34  ;;  %v2889_v35 = vsel %vm141_vm0, %v2887_v53, 0.0 }
0x1423   :  { %2890 = vadd.xlane.f32.xlu1 %v2889_v35 }
0x14af   :  { %v2894_v43 = vpop.xlane.xlu0 %2893 }
0x14b0   :  { %v2896_v46 = vmul.f32 0.03125, %v2894_v43  ;;  %v2891_v36 = vpop.xlane.xlu1 %2890 }
0x14b1   :  { %v2895_v37 = vmul.f32 0.03125, %v2891_v36 }
0x14b2   :  { %v2898_v38 = vadd.f32 1e-05, %v2896_v46 }
0x14b3   :  { %v2897_v39 = vadd.f32 1e-05, %v2895_v37 }
0x14b4   :  { %3788 = vrsqrt.f32 %v2898_v38 }
0x14b5   :  { %3790 = vrsqrt.f32 %v2897_v39 }
0x14be   :  { %v3789_v42 = vpop.eup %3788 }
0x14bf   :  { %v3791_v47 = vpop.eup %3790  ;;  %v2902_v48 = vmul.f32 %v3789_v42, %v2886_v30 }
0x14c0   :  { %v2901_v50 = vmul.f32 %v3791_v47, %v2885_v45 }
0x14c1   :  { %v2908_v52 = vmul.f32 %v2906_v41, %v2902_v48 }
0x14c2   :  { %v2907_v51 = vmul.f32 %v2906_v41, %v2901_v50 }
0x14c3   :  { %v2914_v60 = vadd.f32 %v2912_v44, %v2908_v52 }
0x14c4   :  { %v2913_v54 = vadd.f32 %v2912_v44, %v2907_v51 }
0x14c5   :  { %v2919_v55 = vsel %vm141_vm0, %v2914_v60, 0.0 }
0x14c6   :  { %2920 = vadd.xlane.f32.xlu0 %v2919_v55  ;;  %v2916_v56 = vsel %vm141_vm0, %v2913_v54, 0.0 }
0x14c7   :  { %2917 = vadd.xlane.f32.xlu1 %v2916_v56 }
0x1553   :  { %v2921_v22 = vpop.xlane.xlu0 %2920 }
0x1554   :  { %v2923_v13 = vmul.f32 0.03125, %v2921_v22  ;;  %v2918_v57 = vpop.xlane.xlu1 %2917 }
0x1555   :  { %v2922_v33 = vmul.f32 0.03125, %v2918_v57 }
0x1556   :  { %v2925_v15 = vsub.f32 %v2914_v60, %v2923_v13 }
0x1557   :  { %v2924_v58 = vsub.f32 %v2913_v54, %v2922_v33 }
0x1558   :  { %v2927_v21 = vmul.f32 %v2925_v15, %v2925_v15 }
0x1559   :  { %v2926_v59 = vmul.f32 %v2924_v58, %v2924_v58 }
0x155a   :  { %v2931_v61 = vsel %vm141_vm0, %v2927_v21, 0.0 }
0x155b   :  { %2932 = vadd.xlane.f32.xlu0 %v2931_v61  ;;  %v2928_v9 = vsel %vm141_vm0, %v2926_v59, 0.0 }
0x155c   :  { %2929 = vadd.xlane.f32.xlu1 %v2928_v9 }
0x15e8   :  { %v2933_v5 = vpop.xlane.xlu0 %2932 }
0x15e9   :  { %v2935_v62 = vmul.f32 0.03125, %v2933_v5  ;;  %v2930_v63 = vpop.xlane.xlu1 %2929 }
0x15ea   :  { %v2934_v23 = vmul.f32 0.03125, %v2930_v63 }
0x15eb   :  { %v2937_v0 = vadd.f32 1e-05, %v2935_v62 }
0x15ec   :  { %v2936_v1 = vadd.f32 1e-05, %v2934_v23 }
0x15ed   :  { %3792 = vrsqrt.f32 %v2937_v0 }
0x15ee   :  { %3794 = vrsqrt.f32 %v2936_v1 }
0x15f7   :  { %v3793_v49 = vpop.eup %3792 }
0x15f8   :  { %v3795_v3 = vpop.eup %3794  ;;  %v2941_v4 = vmul.f32 %v3793_v49, %v2925_v15 }
0x15f9   :  { %v2940_v12 = vmul.f32 %v3795_v3, %v2924_v58 }
0x15fa   :  { %v2947_v16 = vmul.f32 %v2945_v24, %v2941_v4 }
0x15fb   :  { %v2946_v18 = vmul.f32 %v2945_v24, %v2940_v12 }
0x15fc   :  { %v2953_v19 = vadd.f32 %v2951_v8, %v2947_v16 }
0x15fd   :  { %v2952_v32 = vadd.f32 %v2951_v8, %v2946_v18 }
0x15fe   :  { %2955 = vst.msk [vmem:[#allocation10 + $0x8] sm:$0xff] %vm141_vm0, %v2953_v19 }
0x15ff   :  { %2954 = vst.msk [vmem:[#allocation10] sm:$0xff] %vm141_vm0, %v2952_v32 }
0x1600   :  { %3895 = shalt.err (!%p3892_p8)
}
0x1601   :  { %s3896_s29 = scalar_lea.hbm %s4433_s5, 256 }
0x1602   :  { %p3897_p9 = scmp.ne.s32.totalorder %s4433_s5, %s3896_s29  ;;  %p3900_p10 = scmp.lt.u32.totalorder %s3896_s29, %s4433_s5 }
0x1604   :  { %p3902_p11 = pnand %p3900_p10, %p3897_p9 }
0x1606   :  { %3905 = shalt.err (!%p3902_p11)
}
0x1607   :  { %2967 = dma.vmem_to_hbm [thread:$0]  %s2962_s28, 256, %s4433_s5, [#allocation4], %s3916_s30, %s3916_s30, %s3917_s6  }
0x1608   :  { %3912 = dma.done.wait [#allocation4], 256  }
0x1609   :  { %3913 = vsyncadd [#allocation4], 4294967040 }
0x160a   :  { %2971 = vsyncpa [#allocation3], 1 }
0x160b   :  { %2972 = vsyncpa [#allocation6], 1 }
0x160c   :  { %2973 = vsyncpa [#allocation9], 1 }
0x160d   :  { %2974 = vsyncpa [#allocation4], 1 }

</bundles_post_ra>
